<compile_context>
chip_gen: v5e
topology: v5e:2x2
jax: 0.10.0
libtpu: 0.0.40
codegen_flags: <defaults>
</compile_context>

<pallas_src>
import math

import jax
import jax.numpy as jnp
from jax.experimental import pallas as pl
from jax.experimental.pallas import tpu as pltpu

# ----------------------------------------------------------------------------
# Module hyper-parameters (deterministic, synthetic setup).
# ----------------------------------------------------------------------------
SCALE = 64.0
MARGIN = 0.5
EASY_MARGIN = False

COS_M = math.cos(MARGIN)
SIN_M = math.sin(MARGIN)
TH = math.cos(math.pi - MARGIN)
MM = math.sin(math.pi - MARGIN) * MARGIN
NORM_EPS = 1e-12  # F.normalize default eps


def arcface_kernel(x_ref, wt_ref, lab_ref, o_ref):
    """One class tile: bf16 cosine matmul, angular margin, one-hot select.

    x_ref   : VMEM (B, D)  pre-normalized bf16 features (resident across grid).
    wt_ref  : VMEM (D, TC) pre-normalized, pre-transposed bf16 weight tile.
    lab_ref : VMEM (B, 1)  int32 labels (resident across grid).
    o_ref   : VMEM (B, TC) scaled f32 logits for this class tile.
    """
    b_blk = x_ref.shape[0]
    tc = wt_ref.shape[1]
    tile_base = pl.program_id(0) * tc  # global class id of column 0

    # cosine = xn @ wn.T, realized as a plain NN matmul on the pre-transposed
    # weight tile (no in-kernel transpose), bf16 inputs, f32 accumulation.
    cosine = jnp.dot(x_ref[...], wt_ref[...],
                     preferred_element_type=jnp.float32)   # (B, TC)

    # phi = cos(theta + m); clamp 1 - cos^2 to [0, 1] to guard the sqrt when a
    # sample is (nearly) collinear with its class weight (canonical ArcFace).
    sine = jnp.sqrt(jnp.clip(1.0 - cosine * cosine, 0.0, 1.0))
    phi = cosine * COS_M - sine * SIN_M
    if EASY_MARGIN:
        phi = jnp.where(cosine > 0.0, phi, cosine)
    else:
        phi = jnp.where(cosine > TH, phi, cosine - MM)

    # One-hot selection: single broadcast compare of global column ids against
    # the per-row label column (O(1) in B, no unrolled OR-chain).
    col_ids = jax.lax.broadcasted_iota(jnp.int32, (b_blk, tc), 1) + tile_base
    is_target = col_ids == lab_ref[...]                     # (B, TC) vs (B, 1)

    # Single select with the scale folded in.
    o_ref[...] = (jnp.where(is_target, phi, cosine) * SCALE).astype(o_ref.dtype)


def arc_margin_product(x, weight, label, *, class_tile=2048):
    """x (B, D) f32, weight (C, D) f32, label (B,) int -> (B, C) f32 logits."""
    B, D = x.shape
    C, D2 = weight.shape
    assert D == D2, "feature dims must match"

    tc = min(class_tile, C)
    assert tc % 128 == 0 and C % tc == 0, "class tile must be lane-dense and divide C"
    # NOTE: for realistic ArcFace heads (C in the 10k-1M range) keep tc in
    # 1024..4096 so each bf16 weight DMA is >= ~1 MiB; the double-buffered
    # (D, tc) bf16 tiles + (B, tc) f32 output stay far below the 32 MiB scoped
    # VMEM budget set below (and v7x's 64 MiB physical VMEM).

    # --- Hoisted, once-per-call preprocessing (plain XLA, outside the kernel) --
    # F.normalize(., dim=1): v / max(||v||, eps), done in f32, then cast to bf16.
    x32 = x.astype(jnp.float32)
    w32 = weight.astype(jnp.float32)
    xn = (x32 * jax.lax.rsqrt(
        jnp.maximum(jnp.sum(x32 * x32, axis=1, keepdims=True),
                    NORM_EPS * NORM_EPS))).astype(jnp.bfloat16)          # (B, D)
    wn = w32 * jax.lax.rsqrt(
        jnp.maximum(jnp.sum(w32 * w32, axis=1, keepdims=True),
                    NORM_EPS * NORM_EPS))
    wt = wn.T.astype(jnp.bfloat16)                                        # (D, C)

    labels = label.astype(jnp.int32).reshape(B, 1)

    cost = pl.CostEstimate(
        flops=2 * B * C * D,
        transcendentals=B * C,                                  # sqrt per logit
        bytes_accessed=2 * B * D + 2 * C * D + 4 * B + 4 * B * C,
    )

    return pl.pallas_call(
        arcface_kernel,
        out_shape=jax.ShapeDtypeStruct((B, C), jnp.float32),
        grid_spec=pltpu.PrefetchScalarGridSpec(
            num_scalar_prefetch=0,
            grid=(C // tc,),
            in_specs=[
                pl.BlockSpec((B, D), lambda j: (0, 0)),    # xn: resident bf16
                # Streamed bf16 weight; if a trace ever shows exposed DMA here,
                # add pipeline_mode=pl.Buffered(3) and sweep the depth.
                pl.BlockSpec((D, tc), lambda j: (0, j)),
                pl.BlockSpec((B, 1), lambda j: (0, 0)),    # labels: resident
            ],
            out_specs=pl.BlockSpec((B, tc), lambda j: (0, j)),
        ),
        compiler_params=pltpu.CompilerParams(
            # Class tiles are independent -> sharded over both TCs on v7x
            # (keep C // tc >= 2 and preferably even there).
            dimension_semantics=("parallel",),
            vmem_limit_bytes=32 * 1024 * 1024,
        ),
        cost_estimate=cost,
    )(xn, wt, labels)


def arc_margin_product_ref(x, weight, label):
    """Pure-JAX f32 reference mirroring the PyTorch forward."""
    xn = x / jnp.maximum(jnp.linalg.norm(x, axis=1, keepdims=True), NORM_EPS)
    wn = weight / jnp.maximum(jnp.linalg.norm(weight, axis=1, keepdims=True), NORM_EPS)
    cosine = xn @ wn.T
    # clamp matches the canonical ArcFace implementation (avoids NaN at |cos|~1)
    sine = jnp.sqrt(jnp.clip(1.0 - cosine ** 2, 0.0, 1.0))
    phi = cosine * COS_M - sine * SIN_M
    if EASY_MARGIN:
        phi = jnp.where(cosine > 0.0, phi, cosine)
    else:
        phi = jnp.where(cosine > TH, phi, cosine - MM)
    one_hot = jax.nn.one_hot(label, weight.shape[0], dtype=jnp.float32)
    return (one_hot * phi + (1.0 - one_hot) * cosine) * SCALE


if __name__ == "__main__":
    key = jax.random.PRNGKey(0)
    kx, kw, kl = jax.random.split(key, 3)

    B = 8
    IN_FEATURES = 128
    OUT_FEATURES = 4096   # 2 class tiles of 2048 -> exercises the streamed path
                          # with an even grid (both TCs on v7x).

    x = jax.random.normal(kx, (B, IN_FEATURES), dtype=jnp.float32)

    # Deterministic xavier_uniform_ init for weight (out_features, in_features).
    limit = math.sqrt(6.0 / (IN_FEATURES + OUT_FEATURES))
    weight = jax.random.uniform(
        kw, (OUT_FEATURES, IN_FEATURES), dtype=jnp.float32,
        minval=-limit, maxval=limit)

    label = jax.random.randint(kl, (B,), 0, OUT_FEATURES, dtype=jnp.int32)

    out = jax.block_until_ready(arc_margin_product(x, weight, label))
    ref = arc_margin_product_ref(x, weight, label)

    assert out.shape == (B, OUT_FEATURES)
    # Normalized x / w are bf16-quantized before the (f32-accumulated) matmul;
    # at scale=64 the expected deviation from the f32 reference is ~1e-2
    # (worst case a few tenths) -- the deliberate trade for halving the
    # HBM-bound weight stream.
    max_err = float(jnp.max(jnp.abs(out - ref)))
    assert jnp.allclose(out, ref, atol=0.5, rtol=2e-2), (
        f"mismatch vs reference, max abs err={max_err}")

    print("KERNEL_OK")
</pallas_src>

<mosaic_0001>
module attributes {stable_mosaic.version = 11 : i64} {
  func.func @arcface_kernel(%arg0: i32, %arg1: memref<8x128xbf16, #tpu.memory_space<vmem>>, %arg2: memref<128x2048xbf16, #tpu.memory_space<vmem>>, %arg3: memref<8x1xi32, #tpu.memory_space<vmem>>, %arg4: memref<8x2048xf32, #tpu.memory_space<vmem>>) attributes {dimension_semantics = [#tpu.dimension_semantics<parallel>], iteration_bounds = array<i64: 2>, scalar_prefetch = 0 : i64, scratch_operands = 0 : i64, tpu.core_type = #tpu.core_type<tc>, window_params = [{pipeline_mode = #tpu.pipeline_mode<synchronous>, transform_indices = @transform_0, window_bounds = array<i64: 8, 128>}, {transform_indices = @transform_1, window_bounds = array<i64: 128, 2048>}, {pipeline_mode = #tpu.pipeline_mode<synchronous>, transform_indices = @transform_2, window_bounds = array<i64: 8, 1>}, {transform_indices = @transform_3, window_bounds = array<i64: 8, 2048>}]} {
    %c2048_i32 = arith.constant 2048 : i32
    %0 = arith.muli %arg0, %c2048_i32 : i32
    %c0 = arith.constant 0 : index
    %c0_0 = arith.constant 0 : index
    %1 = vector.load %arg1[%c0, %c0_0] : memref<8x128xbf16, #tpu.memory_space<vmem>>, vector<8x128xbf16>
    %c0_1 = arith.constant 0 : index
    %c0_2 = arith.constant 0 : index
    %2 = vector.load %arg2[%c0_1, %c0_2] : memref<128x2048xbf16, #tpu.memory_space<vmem>>, vector<128x2048xbf16>
    %cst = arith.constant dense<0.000000e+00> : vector<8x2048xf32>
    %3 = tpu.matmul %1, %2, %cst {dimension_numbers = #tpu.dot_dimension_numbers<[1], [0], [0], [1], [0, 0, 1, 1], [], []>} : vector<8x128xbf16>, vector<128x2048xbf16>, vector<8x2048xf32> -> vector<8x2048xf32>
    %4 = arith.mulf %3, %3 : vector<8x2048xf32>
    %cst_3 = arith.constant 1.000000e+00 : f32
    %5 = vector.broadcast %cst_3 : f32 to vector<8x2048xf32>
    %6 = arith.subf %5, %4 : vector<8x2048xf32>
    %cst_4 = arith.constant 0.000000e+00 : f32
    %cst_5 = arith.constant 1.000000e+00 : f32
    %7 = vector.broadcast %cst_4 : f32 to vector<8x2048xf32>
    %8 = arith.maximumf %7, %6 : vector<8x2048xf32>
    %9 = vector.broadcast %cst_5 : f32 to vector<8x2048xf32>
    %10 = arith.minimumf %9, %8 : vector<8x2048xf32>
    %11 = math.sqrt %10 : vector<8x2048xf32>
    %cst_6 = arith.constant 0.87758255 : f32
    %12 = vector.broadcast %cst_6 : f32 to vector<8x2048xf32>
    %13 = arith.mulf %3, %12 : vector<8x2048xf32>
    %cst_7 = arith.constant 0.47942555 : f32
    %14 = vector.broadcast %cst_7 : f32 to vector<8x2048xf32>
    %15 = arith.mulf %11, %14 : vector<8x2048xf32>
    %16 = arith.subf %13, %15 : vector<8x2048xf32>
    %cst_8 = arith.constant -0.87758255 : f32
    %17 = vector.broadcast %cst_8 : f32 to vector<8x2048xf32>
    %18 = arith.cmpf ogt, %3, %17 : vector<8x2048xf32>
    %cst_9 = arith.constant 0.239712775 : f32
    %19 = vector.broadcast %cst_9 : f32 to vector<8x2048xf32>
    %20 = arith.subf %3, %19 : vector<8x2048xf32>
    %21 = arith.select %18, %16, %20 : vector<8x2048xi1>, vector<8x2048xf32>
    %22 = tpu.iota {dimensions = array<i32: 1>} : vector<8x2048xi32>
    %23 = vector.broadcast %0 : i32 to vector<8x2048xi32>
    %24 = arith.addi %22, %23 : vector<8x2048xi32>
    %c0_10 = arith.constant 0 : index
    %c0_11 = arith.constant 0 : index
    %25 = vector.load %arg3[%c0_10, %c0_11] : memref<8x1xi32, #tpu.memory_space<vmem>>, vector<8x1xi32>
    %26 = vector.broadcast %25 : vector<8x1xi32> to vector<8x2048xi32>
    %27 = arith.cmpi eq, %24, %26 : vector<8x2048xi32>
    %28 = arith.select %27, %21, %3 : vector<8x2048xi1>, vector<8x2048xf32>
    %cst_12 = arith.constant 6.400000e+01 : f32
    %29 = vector.broadcast %cst_12 : f32 to vector<8x2048xf32>
    %30 = arith.mulf %28, %29 : vector<8x2048xf32>
    %c0_13 = arith.constant 0 : index
    %c0_14 = arith.constant 0 : index
    %31 = vector.load %arg4[%c0_13, %c0_14] : memref<8x2048xf32, #tpu.memory_space<vmem>>, vector<8x2048xf32>
    tpu.vector_store %arg4[%c0_13, %c0_14], %30 {strides = array<i32>} : memref<8x2048xf32, #tpu.memory_space<vmem>>, vector<8x2048xf32>,
    return
  }
  func.func @transform_0(%arg0: i32) -> (i32, i32) {
    %c0_i32 = arith.constant 0 : i32
    %c0_i32_0 = arith.constant 0 : i32
    %c0_i32_1 = arith.constant 0 : i32
    return %c0_i32, %c0_i32_0 : i32, i32
  }
  func.func @transform_1(%arg0: i32) -> (i32, i32) {
    %c0_i32 = arith.constant 0 : i32
    %c0_i32_0 = arith.constant 0 : i32
    return %c0_i32, %arg0 : i32, i32
  }
  func.func @transform_2(%arg0: i32) -> (i32, i32) {
    %c0_i32 = arith.constant 0 : i32
    %c0_i32_0 = arith.constant 0 : i32
    %c0_i32_1 = arith.constant 0 : i32
    return %c0_i32, %c0_i32_0 : i32, i32
  }
  func.func @transform_3(%arg0: i32) -> (i32, i32) {
    %c0_i32 = arith.constant 0 : i32
    %c0_i32_0 = arith.constant 0 : i32
    return %c0_i32, %arg0 : i32, i32
  }
}

</mosaic_0001>

<bundles_post_ra>
// kernel: tpu_custom_call.1
= control target key start
LH: loop header
LB: loop body
LE: loop exit
PB: predicated region body
PF: predicated region fallthrough
CT: control target
= control target key end

     0   :  { %8 = vsyncpa [#allocation3], 0  ;;  %s3367_s0 = inlined_call_operand.vmem [shape: bf16[8,128], index: 0, kind: input, shape index: {}]   ;;  %s3368_s1 = inlined_call_operand.hbm [shape: bf16[128,4096], index: 1, kind: input, shape index: {}]   ;;  %s3369_s2 = inlined_call_operand.vmem [shape: s32[8,1], index: 2, kind: input, shape index: {}]   ;;  %s3370_s3 = inlined_call_operand.hbm [shape: f32[8,4096], index: 3, kind: output, shape index: {}]  }
   0x1   :  { %10 = vsyncpa [#allocation3 + $0x1], 0 }
   0x2   :  { %11 = vsyncpa [#allocation4], 0 }
   0x3   :  { %13 = vsyncpa [#allocation4 + $0x1], 0  ;;  %s2590_s12 = smov 0   ;;  %s2592_s13 = smov 0  }
   0x4   :  { %s2594_s14 = smov 0   ;;  %s2596_s15 = smov 0  }
   0x5 LB: > { %s2611_s16 = sadd.s32 4294967295, %s2564_s15   ;;  %s1712_s17 = sadd.s32 4294967294, %s2564_s15   ;;  %s2564_s15 = sphi %s2596_s15, %s3379_s15   ;;  %s2560_s14 = sphi %s2594_s14, %s3378_s14   ;;  %s2556_s13 = sphi %s2592_s13, %s3377_s13   ;;  %s2552_s12 = sphi %s2590_s12, %s3376_s12  }
   0x6   : > { %s2615_s18 = sadd.s32 1, %s2564_s15   ;;  %s47_s19 = sadd.s32 1, %s2560_s14 }
   0x7   : > { %s44_s20 = ssub.s32 %s2564_s15, %s2615_s18  ;;  %p54_p0 = scmp.ne.s32.totalorder %s2560_s14, %s2556_s13 }
   0x8   : > { %p45_p1 = scmp.eq.s32.totalorder %s44_s20, 0  ;;  %p55_p2 = scmp.eq.s32.totalorder %s2564_s15, 0 }
   0x9   : > { %p60_p3 = scmp.ne.s32.totalorder %s2556_s13, %s2552_s12  ;;  %p61_p4 = scmp.eq.s32.totalorder %s2611_s16, 0 }
   0xa   : > { %s2627_s21 = scalar_select %p45_p1, %s2560_s14, %s47_s19  }
   0xb   : > { %p2629_p5 = por %p55_p2, %p54_p0  ;;  %p2633_p6 = por %p61_p4, %p60_p3 }
   0xc   : > { %p105_p7 = scmp.eq.s32.totalorder %s2611_s16, 1  ;;  %p111_p8 = scmp.eq.s32.totalorder %s1712_s17, 1 }
   0xd   : > { %p1714_p9 = scmp.ge.s32.totalorder %s2564_s15, 2  ;;  %p2397_p10 = scmp.lt.s32.totalorder %s2564_s15, 2 }
   0xe   : > { %p2640_p11 = por %p105_p7, %p54_p0  ;;  %p2644_p12 = por %p111_p8, %p60_p3 }
   0xf   : > { %s137_s26 = sand.u32 1, %s2560_s14   ;;  %s2255_s27 = sshll.u32 %s2564_s15, 6 }
  0x10   : > { %s1715_s28 = sshll.u32 %s137_s26, 10  ;;  %s146_s4 = scalar_lea.hbm %s3368_s1, %s2255_s27 }
  0x11   : > { %s147_s5 = sshll.u32 %s146_s4, 4  ;;  %s141_s6 = scalar_lea.vmem [#allocation2], %s1715_s28  ;;  %s148_s5 = int_to_ptr.hbm [resolvable:$true] %s147_s5 }
  0x12   : > { %s149_s7 = sshll.u32 %s141_s6, 4  ;;  %p2655_p13 = pnand %p2397_p10, %p2629_p5  ;;  %s150_s7 = int_to_ptr.vmem [resolvable:$true] %s149_s7 }
  0x13   : > { %p1718_p0 = scmp.ge.s32.totalorder %s2564_s15, 1  ;;  %s138_s9 = scalar_lea.sflag [#allocation3], %s137_s26 }
  0x14   : > { %s2468_s10 = sshra.s32 %s148_s5, 4  ;;  %p2472_p2 = pneg %p2655_p13  ;;  %s2469_s10 = int_to_ptr.hbm [resolvable:$true] %s2468_s10 }
  0x15   : > { %s2470_s11 = scalar_lea.hbm %s2469_s10, 1024  ;;  %s2475_s20 = scalar_lea.hbm %s3368_s1, 2048 }
  0x16   : > { %p2471_p1 = scmp.ne.s32.totalorder %s2469_s10, %s2470_s11  ;;  %p2476_p5 = scmp.lt.s32.totalorder %s2469_s10, %s3368_s1 }
  0x17   : > { %p2477_p7 = scmp.lt.s32.totalorder %s2475_s20, %s2470_s11 }
  0x18   : > { %p2473_p3 = pnand %p2472_p2, %p2471_p1 }
  0x19   : > { %p2478_p8 = por %p2477_p7, %p2476_p5 }
  0x1a   : > { %p2474_p4 = pneg %p2473_p3 }
  0x1c   : > { %p2479_p10 = pnand %p2478_p8, %p2474_p4 }
  0x1e   : > { %2482 = shalt.err (!%p2479_p10)
}
  0x1f   : > { %s2566_s26 = smov 2048   ;;  %s2567_s28 = smov 1024  }
  0x20   : > { %s2568_s29 = smov 64   ;;  %p157_p1 = scmp.lt.s32.totalorder %s2564_s15, 3 }
  0x21   : > { %2392 = dma.hbm_to_vmem [thread:$0]  (!%p2655_p13), %s148_s5, 16384, %s150_s7, %s138_s9, %s2566_s26, %s2567_s28, %s2568_s29  }
  0x22   : > { %p158_p2 = pnand %p1718_p0, %p157_p1 }
  0x23   : > { %s2674_s30 = sand.u32 (!%p158_p2), 1, %s2556_s13  }
  0x24   : > { %161 = sbr.rel (%p158_p2) target bundleno = 352 (0x160), region = 32  ;;  %s1719_s4 = sshll.u32 (!%p158_p2), %s2674_s30, 10 }
  0x25   : > { %s164_s6 = scalar_lea.sflag (!%p158_p2), [#allocation3], %s2674_s30  ;;  %s2678_s10 = scalar_lea.vmem (!%p158_p2), [#allocation2], %s1719_s4 }
  0x29   : > { %2543 = dma.done.wait (%p2633_p6), %s164_s6, 16384  }
  0x2a   : > { %2545 = vsyncadd (%p2633_p6), %s164_s6, 4294950912  ;;  %v2172_v0 = vld [vmem:[%s2678_s10 + $0x380] sm:$0xf]  ;;  %v2368_v2 = vld [vmem:[%s2678_s10 + $0x384] sm:$0xf]  ;;  %s1721_s9 = sshll.u32 %s2611_s16, 11 }
  0x2b   : > { %v2376_v1 = vld [vmem:[%s2678_s10 + $0x3bc] sm:$0xf0]  ;;  %v2174_v4 = vld [vmem:[%s2678_s10 + $0x3c0] sm:$0xf0]  ;;  %v2180_v5 = vld [vmem:[%s2678_s10 + $0x388] sm:$0xf] }
  0x2c   : > { %v2173_v3 = vor.u32 %v2376_v1, %v2172_v0  ;;  %v2377_v6 = vld [vmem:[%s2678_s10 + $0x3c4] sm:$0xf0]  ;;  %v2177_v7 = vor.u32 %v2368_v2, %v2174_v4  ;;  %v2369_v9 = vld [vmem:[%s2678_s10 + $0x38c] sm:$0xf]  ;;  %v2108_v11 = vld [vmem:[%s2678_s10 + $0x300] sm:$0xf] }
  0x2d   : > { %v2181_v8 = vor.u32 %v2377_v6, %v2180_v5  ;;  %v2182_v10 = vld [vmem:[%s2678_s10 + $0x3c8] sm:$0xf0]  ;;  %v2360_v13 = vld [vmem:[%s2678_s10 + $0x33c] sm:$0xf0]  ;;  %v2352_v14 = vld [vmem:[%s2678_s10 + $0x304] sm:$0xf] }
  0x2e   : > { %963 = vmatpush.bf16.msra.mxu0 %v2173_v3  ;;  %v2185_v12 = vor.u32 %v2369_v9, %v2182_v10  ;;  %v2110_v15 = vld [vmem:[%s2678_s10 + $0x340] sm:$0xf0]  ;;  %976 = vmatpush.bf16.msra.mxu1 %v2177_v7  ;;  %v2109_v16 = vor.u32 %v2360_v13, %v2108_v11  ;;  %v2116_v18 = vld [vmem:[%s2678_s10 + $0x308] sm:$0xf]  ;;  %v2353_v20 = vld [vmem:[%s2678_s10 + $0x30c] sm:$0xf] }
  0x2f   : > { %989 = vmatpush.bf16.msra.mxu2 %v2181_v8  ;;  %v2113_v17 = vor.u32 %v2352_v14, %v2110_v15  ;;  %v2361_v19 = vld [vmem:[%s2678_s10 + $0x344] sm:$0xf0]  ;;  %v2118_v22 = vld [vmem:[%s2678_s10 + $0x348] sm:$0xf0]  ;;  %v2044_v23 = vld [vmem:[%s2678_s10 + $0x280] sm:$0xf] }
  0x30   : > { %1002 = vmatpush.bf16.msra.mxu3 %v2185_v12  ;;  %v2117_v21 = vor.u32 %v2361_v19, %v2116_v18  ;;  %v2344_v24 = vld [vmem:[%s2678_s10 + $0x2bc] sm:$0xf0]  ;;  %v2121_v25 = vor.u32 %v2353_v20, %v2118_v22  ;;  %v2336_v26 = vld [vmem:[%s2678_s10 + $0x284] sm:$0xf]  ;;  %v2052_v28 = vld [vmem:[%s2678_s10 + $0x288] sm:$0xf] }
  0x31   : > { %v2046_v27 = vld [vmem:[%s2678_s10 + $0x2c0] sm:$0xf0]  ;;  %v2045_v29 = vor.u32 %v2344_v24, %v2044_v23  ;;  %v2345_v30 = vld [vmem:[%s2678_s10 + $0x2c4] sm:$0xf0]  ;;  %v2337_v31 = vld [vmem:[%s2678_s10 + $0x28c] sm:$0xf] }
  0x32   : > { %964 = vmatpush.bf16.msra.mxu0 %v2109_v16  ;;  %v2054_v32 = vld [vmem:[%s2678_s10 + $0x2c8] sm:$0xf0]  ;;  %977 = vmatpush.bf16.msra.mxu1 %v2113_v17  ;;  %v2049_v33 = vor.u32 %v2336_v26, %v2046_v27  ;;  %v2053_v34 = vor.u32 %v2345_v30, %v2052_v28  ;;  %v1980_v35 = vld [vmem:[%s2678_s10 + $0x200] sm:$0xf]  ;;  %v2320_v37 = vld [vmem:[%s2678_s10 + $0x204] sm:$0xf] }
  0x33   : > { %990 = vmatpush.bf16.msra.mxu2 %v2117_v21  ;;  %v2328_v36 = vld [vmem:[%s2678_s10 + $0x23c] sm:$0xf0]  ;;  %v2057_v38 = vor.u32 %v2337_v31, %v2054_v32  ;;  %v1982_v39 = vld [vmem:[%s2678_s10 + $0x240] sm:$0xf0]  ;;  %v1988_v40 = vld [vmem:[%s2678_s10 + $0x208] sm:$0xf] }
  0x34   : > { %1003 = vmatpush.bf16.msra.mxu3 %v2121_v25  ;;  %v2329_v41 = vld [vmem:[%s2678_s10 + $0x244] sm:$0xf0]  ;;  %v2321_v42 = vld [vmem:[%s2678_s10 + $0x20c] sm:$0xf]  ;;  %v1981_v44 = vor.u32 %v2328_v36, %v1980_v35  ;;  %v1985_v45 = vor.u32 %v2320_v37, %v1982_v39  ;;  %v1916_v47 = vld [vmem:[%s2678_s10 + $0x180] sm:$0xf] }
  0x35   : > { %v1990_v43 = vld [vmem:[%s2678_s10 + $0x248] sm:$0xf0]  ;;  %v1989_v46 = vor.u32 %v2329_v41, %v1988_v40  ;;  %v2312_v48 = vld [vmem:[%s2678_s10 + $0x1bc] sm:$0xf0]  ;;  %v2304_v49 = vld [vmem:[%s2678_s10 + $0x184] sm:$0xf] }
  0x36   : > { %965 = vmatpush.bf16.msra.mxu0 %v2045_v29  ;;  %978 = vmatpush.bf16.msra.mxu1 %v2049_v33  ;;  %v1993_v50 = vor.u32 %v2321_v42, %v1990_v43  ;;  %v1918_v51 = vld [vmem:[%s2678_s10 + $0x1c0] sm:$0xf0]  ;;  %v1924_v52 = vld [vmem:[%s2678_s10 + $0x188] sm:$0xf]  ;;  %v2305_v54 = vld [vmem:[%s2678_s10 + $0x18c] sm:$0xf]  ;;  %v1917_v56 = vor.u32 %v2312_v48, %v1916_v47 }
  0x37   : > { %991 = vmatpush.bf16.msra.mxu2 %v2053_v34  ;;  %v2313_v53 = vld [vmem:[%s2678_s10 + $0x1c4] sm:$0xf0]  ;;  %v1926_v55 = vld [vmem:[%s2678_s10 + $0x1c8] sm:$0xf0]  ;;  %v1921_v57 = vor.u32 %v2304_v49, %v1918_v51  ;;  %v1852_v59 = vld [vmem:[%s2678_s10 + $0x100] sm:$0xf] }
  0x38   : > { %1004 = vmatpush.bf16.msra.mxu3 %v2057_v38  ;;  %v1925_v58 = vor.u32 %v2313_v53, %v1924_v52  ;;  %v2296_v60 = vld [vmem:[%s2678_s10 + $0x13c] sm:$0xf0]  ;;  %v2288_v61 = vld [vmem:[%s2678_s10 + $0x104] sm:$0xf]  ;;  %v1929_v62 = vor.u32 %v2305_v54, %v1926_v55  ;;  %v1860_v0 = vld [vmem:[%s2678_s10 + $0x108] sm:$0xf] }
  0x39   : > { %v1854_v63 = vld [vmem:[%s2678_s10 + $0x140] sm:$0xf0]  ;;  %v2297_v1 = vld [vmem:[%s2678_s10 + $0x144] sm:$0xf0]  ;;  %v2289_v2 = vld [vmem:[%s2678_s10 + $0x10c] sm:$0xf]  ;;  %v1853_v4 = vor.u32 %v2296_v60, %v1852_v59 }
  0x3a   : > { %966 = vmatpush.bf16.msra.mxu0 %v1981_v44  ;;  %979 = vmatpush.bf16.msra.mxu1 %v1985_v45  ;;  %v1862_v3 = vld [vmem:[%s2678_s10 + $0x148] sm:$0xf0]  ;;  %v1857_v5 = vor.u32 %v2288_v61, %v1854_v63  ;;  %v1861_v6 = vor.u32 %v2297_v1, %v1860_v0  ;;  %v1788_v7 = vld [vmem:[%s2678_s10 + $0x80] sm:$0xf]  ;;  %v2272_v9 = vld [vmem:[%s2678_s10 + $0x84] sm:$0xf] }
  0x3b   : > { %992 = vmatpush.bf16.msra.mxu2 %v1989_v46  ;;  %v2280_v8 = vld [vmem:[%s2678_s10 + $0xbc] sm:$0xf0]  ;;  %v1865_v10 = vor.u32 %v2289_v2, %v1862_v3  ;;  %v1790_v11 = vld [vmem:[%s2678_s10 + $0xc0] sm:$0xf0]  ;;  %v1796_v12 = vld [vmem:[%s2678_s10 + $0x88] sm:$0xf] }
  0x3c   : > { %1005 = vmatpush.bf16.msra.mxu3 %v1993_v50  ;;  %v2281_v13 = vld [vmem:[%s2678_s10 + $0xc4] sm:$0xf0]  ;;  %v2273_v14 = vld [vmem:[%s2678_s10 + $0x8c] sm:$0xf]  ;;  %v1789_v16 = vor.u32 %v2280_v8, %v1788_v7  ;;  %v1724_v17 = vld [vmem:[%s2678_s10] sm:$0xf]  ;;  %v1793_v19 = vor.u32 %v2272_v9, %v1790_v11 }
  0x3d   : > { %v1798_v15 = vld [vmem:[%s2678_s10 + $0xc8] sm:$0xf0]  ;;  %v2264_v18 = vld [vmem:[%s2678_s10 + $0x3c] sm:$0xf0]  ;;  %v1797_v20 = vor.u32 %v2281_v13, %v1796_v12  ;;  %v2256_v21 = vld [vmem:[%s2678_s10 + $0x4] sm:$0xf] }
  0x3e   : > { %967 = vmatpush.bf16.msra.mxu0 %v1917_v56  ;;  %980 = vmatpush.bf16.msra.mxu1 %v1921_v57  ;;  %v1726_v22 = vld [vmem:[%s2678_s10 + $0x40] sm:$0xf0]  ;;  %v1732_v23 = vld [vmem:[%s2678_s10 + $0x8] sm:$0xf]  ;;  %v1801_v24 = vor.u32 %v2273_v14, %v1798_v15  ;;  %v2257_v26 = vld [vmem:[%s2678_s10 + $0xc] sm:$0xf]  ;;  %v1725_v31 = vor.u32 %v2264_v18, %v1724_v17 }
  0x3f   : > { %993 = vmatpush.bf16.msra.mxu2 %v1925_v58  ;;  %v2265_v25 = vld [vmem:[%s2678_s10 + $0x44] sm:$0xf0]  ;;  %v1734_v27 = vld [vmem:[%s2678_s10 + $0x48] sm:$0xf0]  ;;  %v2188_v28 = vld [vmem:[%s2678_s10 + $0x390] sm:$0xf]  ;;  %v1729_v35 = vor.u32 %v2256_v21, %v1726_v22 }
  0x40   : > { %1006 = vmatpush.bf16.msra.mxu3 %v1929_v62  ;;  %v2378_v29 = vld [vmem:[%s2678_s10 + $0x3cc] sm:$0xf0]  ;;  %v2370_v30 = vld [vmem:[%s2678_s10 + $0x394] sm:$0xf]  ;;  %v2196_v33 = vld [vmem:[%s2678_s10 + $0x398] sm:$0xf]  ;;  %v1733_v36 = vor.u32 %v2265_v25, %v1732_v23  ;;  %v1737_v39 = vor.u32 %v2257_v26, %v1734_v27 }
  0x41   : > { %v2190_v32 = vld [vmem:[%s2678_s10 + $0x3d0] sm:$0xf0]  ;;  %v2379_v34 = vld [vmem:[%s2678_s10 + $0x3d4] sm:$0xf0]  ;;  %v2371_v37 = vld [vmem:[%s2678_s10 + $0x39c] sm:$0xf]  ;;  %v2189_v40 = vor.u32 %v2378_v29, %v2188_v28 }
  0x42   : > { %968 = vmatpush.bf16.msra.mxu0 %v1853_v4  ;;  %981 = vmatpush.bf16.msra.mxu1 %v1857_v5  ;;  %v2198_v38 = vld [vmem:[%s2678_s10 + $0x3d8] sm:$0xf0]  ;;  %v2193_v41 = vor.u32 %v2370_v30, %v2190_v32  ;;  %v2197_v42 = vor.u32 %v2379_v34, %v2196_v33  ;;  %v2124_v43 = vld [vmem:[%s2678_s10 + $0x310] sm:$0xf]  ;;  %v2354_v45 = vld [vmem:[%s2678_s10 + $0x314] sm:$0xf] }
  0x43   : > { %994 = vmatpush.bf16.msra.mxu2 %v1861_v6  ;;  %v2362_v44 = vld [vmem:[%s2678_s10 + $0x34c] sm:$0xf0]  ;;  %v2201_v46 = vor.u32 %v2371_v37, %v2198_v38  ;;  %v2126_v47 = vld [vmem:[%s2678_s10 + $0x350] sm:$0xf0]  ;;  %v2132_v48 = vld [vmem:[%s2678_s10 + $0x318] sm:$0xf] }
  0x44   : > { %1007 = vmatpush.bf16.msra.mxu3 %v1865_v10  ;;  %v2363_v49 = vld [vmem:[%s2678_s10 + $0x354] sm:$0xf0]  ;;  %v2765_v50 = vld [vmem:[%s3367_s0] sm:$0xf]  ;;  %v2355_v51 = vld [vmem:[%s2678_s10 + $0x31c] sm:$0xf]  ;;  %v2125_v53 = vor.u32 %v2362_v44, %v2124_v43  ;;  %v2129_v54 = vor.u32 %v2354_v45, %v2126_v47 }
  0x45   : > { %v2134_v52 = vld [vmem:[%s2678_s10 + $0x358] sm:$0xf0]  ;;  %v2133_v55 = vor.u32 %v2363_v49, %v2132_v48  ;;  %v2060_v56 = vld [vmem:[%s2678_s10 + $0x290] sm:$0xf]  ;;  %v2338_v58 = vld [vmem:[%s2678_s10 + $0x294] sm:$0xf] }
  0x46   : > { %969 = vmatpush.bf16.msra.mxu0 %v1789_v16  ;;  %982 = vmatpush.bf16.msra.mxu1 %v1793_v19  ;;  %v2346_v57 = vld [vmem:[%s2678_s10 + $0x2cc] sm:$0xf0]  ;;  %v2137_v59 = vor.u32 %v2355_v51, %v2134_v52  ;;  %v2062_v60 = vld [vmem:[%s2678_s10 + $0x2d0] sm:$0xf0]  ;;  %v2068_v61 = vld [vmem:[%s2678_s10 + $0x298] sm:$0xf] }
  0x47   : > { %995 = vmatpush.bf16.msra.mxu2 %v1797_v20  ;;  %v2347_v62 = vld [vmem:[%s2678_s10 + $0x2d4] sm:$0xf0]  ;;  %v2339_v63 = vld [vmem:[%s2678_s10 + $0x29c] sm:$0xf]  ;;  %v2061_v1 = vor.u32 %v2346_v57, %v2060_v56  ;;  %v2065_v2 = vor.u32 %v2338_v58, %v2062_v60  ;;  %v1996_v4 = vld [vmem:[%s2678_s10 + $0x210] sm:$0xf] }
  0x48   : > { %1008 = vmatpush.bf16.msra.mxu3 %v1801_v24  ;;  %v2070_v0 = vld [vmem:[%s2678_s10 + $0x2d8] sm:$0xf0]  ;;  %v2069_v3 = vor.u32 %v2347_v62, %v2068_v61  ;;  %v2330_v5 = vld [vmem:[%s2678_s10 + $0x24c] sm:$0xf0]  ;;  %v2322_v6 = vld [vmem:[%s2678_s10 + $0x214] sm:$0xf] }
  0x49   : > { %v2073_v7 = vor.u32 %v2339_v63, %v2070_v0  ;;  %v1998_v8 = vld [vmem:[%s2678_s10 + $0x250] sm:$0xf0]  ;;  %v2004_v9 = vld [vmem:[%s2678_s10 + $0x218] sm:$0xf]  ;;  %v2323_v11 = vld [vmem:[%s2678_s10 + $0x21c] sm:$0xf]  ;;  %v1997_v13 = vor.u32 %v2330_v5, %v1996_v4 }
  0x4a   : > { %970 = vmatpush.bf16.msra.mxu0 %v1725_v31  ;;  %983 = vmatpush.bf16.msra.mxu1 %v1729_v35  ;;  %v2331_v10 = vld [vmem:[%s2678_s10 + $0x254] sm:$0xf0]  ;;  %v2006_v12 = vld [vmem:[%s2678_s10 + $0x258] sm:$0xf0]  ;;  %v2001_v14 = vor.u32 %v2322_v6, %v1998_v8  ;;  %v1932_v16 = vld [vmem:[%s2678_s10 + $0x190] sm:$0xf] }
  0x4b   : > { %996 = vmatpush.bf16.msra.mxu2 %v1733_v36  ;;  %v2005_v15 = vor.u32 %v2331_v10, %v2004_v9  ;;  %v2314_v17 = vld [vmem:[%s2678_s10 + $0x1cc] sm:$0xf0]  ;;  %v2306_v18 = vld [vmem:[%s2678_s10 + $0x194] sm:$0xf]  ;;  %v2009_v19 = vor.u32 %v2323_v11, %v2006_v12  ;;  %v1940_v21 = vld [vmem:[%s2678_s10 + $0x198] sm:$0xf] }
  0x4c   : > { %1009 = vmatpush.bf16.msra.mxu3 %v1737_v39  ;;  %v1934_v20 = vld [vmem:[%s2678_s10 + $0x1d0] sm:$0xf0]  ;;  %v2315_v22 = vld [vmem:[%s2678_s10 + $0x1d4] sm:$0xf0]  ;;  %v2307_v23 = vld [vmem:[%s2678_s10 + $0x19c] sm:$0xf]  ;;  %v1933_v25 = vor.u32 %v2314_v17, %v1932_v16 }
  0x4d   : > { %971 = vmatmul.bf16.vlgmr.msra.gmra.mxu0 %v2765_v50  ;;  %984 = vmatmul.bf16.vlgmr.msra.gmra.mxu1 %v2765_v50  ;;  %v1942_v24 = vld [vmem:[%s2678_s10 + $0x1d8] sm:$0xf0]  ;;  %v1937_v26 = vor.u32 %v2306_v18, %v1934_v20  ;;  %v1941_v27 = vor.u32 %v2315_v22, %v1940_v21  ;;  %v1868_v28 = vld [vmem:[%s2678_s10 + $0x110] sm:$0xf]  ;;  %v2290_v30 = vld [vmem:[%s2678_s10 + $0x114] sm:$0xf] }
  0x4e   : > { %1015 = vmatpush.bf16.msrb.mxu0 %v2189_v40  ;;  %1028 = vmatpush.bf16.msrb.mxu1 %v2193_v41  ;;  %v2298_v29 = vld [vmem:[%s2678_s10 + $0x14c] sm:$0xf0]  ;;  %v1945_v31 = vor.u32 %v2307_v23, %v1942_v24  ;;  %v1870_v32 = vld [vmem:[%s2678_s10 + $0x150] sm:$0xf0]  ;;  %v1876_v33 = vld [vmem:[%s2678_s10 + $0x118] sm:$0xf] }
  0x4f   : > { %1041 = vmatpush.bf16.msrb.mxu2 %v2197_v42  ;;  %1010 = vmatmul.bf16.vlgmr.msra.gmra.mxu3 %v2765_v50  ;;  %v2299_v34 = vld [vmem:[%s2678_s10 + $0x154] sm:$0xf0]  ;;  %v2291_v35 = vld [vmem:[%s2678_s10 + $0x11c] sm:$0xf]  ;;  %v1869_v37 = vor.u32 %v2298_v29, %v1868_v28  ;;  %v1873_v38 = vor.u32 %v2290_v30, %v1870_v32  ;;  %v1804_v40 = vld [vmem:[%s2678_s10 + $0x90] sm:$0xf] }
  0x50   : > { %1054 = vmatpush.bf16.msrb.mxu3 %v2201_v46  ;;  %997 = vmatmul.bf16.vlgmr.msra.gmra.mxu2 %v2765_v50  ;;  %v1878_v36 = vld [vmem:[%s2678_s10 + $0x158] sm:$0xf0]  ;;  %v1877_v39 = vor.u32 %v2299_v34, %v1876_v33  ;;  %v2282_v41 = vld [vmem:[%s2678_s10 + $0xcc] sm:$0xf0]  ;;  %v2274_v42 = vld [vmem:[%s2678_s10 + $0x94] sm:$0xf] }
  0x51   : > { %v1881_v43 = vor.u32 %v2291_v35, %v1878_v36  ;;  %v1806_v44 = vld [vmem:[%s2678_s10 + $0xd0] sm:$0xf0]  ;;  %v1812_v45 = vld [vmem:[%s2678_s10 + $0x98] sm:$0xf]  ;;  %v2275_v47 = vld [vmem:[%s2678_s10 + $0x9c] sm:$0xf]  ;;  %v1805_v49 = vor.u32 %v2282_v41, %v1804_v40 }
  0x52   : > { %1016 = vmatpush.bf16.msrb.mxu0 %v2125_v53  ;;  %1029 = vmatpush.bf16.msrb.mxu1 %v2129_v54  ;;  %v2283_v46 = vld [vmem:[%s2678_s10 + $0xd4] sm:$0xf0]  ;;  %v1814_v48 = vld [vmem:[%s2678_s10 + $0xd8] sm:$0xf0]  ;;  %v1740_v51 = vld [vmem:[%s2678_s10 + $0x10] sm:$0xf]  ;;  %v1809_v54 = vor.u32 %v2274_v42, %v1806_v44 }
  0x53   : > { %1042 = vmatpush.bf16.msrb.mxu2 %v2133_v55  ;;  %v2266_v52 = vld [vmem:[%s2678_s10 + $0x4c] sm:$0xf0]  ;;  %v1557_v53 = vld [vmem:[%s3369_s2] sm:$0xff]  ;;  %v1813_v55 = vor.u32 %v2283_v46, %v1812_v45  ;;  %v2258_v56 = vld [vmem:[%s2678_s10 + $0x14] sm:$0xf]  ;;  %v2569_v63 = vmov 0  }
  0x54   : > { %1055 = vmatpush.bf16.msrb.mxu3 %v2137_v59  ;;  %v1742_v57 = vld [vmem:[%s2678_s10 + $0x50] sm:$0xf0]  ;;  %v1748_v58 = vld [vmem:[%s2678_s10 + $0x18] sm:$0xf]  ;;  %v1817_v59 = vor.u32 %v2275_v47, %v1814_v48  ;;  %v2259_v61 = vld [vmem:[%s2678_s10 + $0x1c] sm:$0xf]  ;;  %2435 = vset.pattern.permute.xlu0 %v2569_v63 }
  0x55   : > { %v2267_v60 = vld [vmem:[%s2678_s10 + $0x54] sm:$0xf0]  ;;  %v1750_v62 = vld [vmem:[%s2678_s10 + $0x58] sm:$0xf0]  ;;  %v2204_v0 = vld [vmem:[%s2678_s10 + $0x3a0] sm:$0xf]  ;;  %1559 = vperm.xlu0 %2435, %v1557_v53  }
  0x56   : > { %1017 = vmatpush.bf16.msrb.mxu0 %v2061_v1  ;;  %1030 = vmatpush.bf16.msrb.mxu1 %v2065_v2  ;;  %v2380_v1 = vld [vmem:[%s2678_s10 + $0x3dc] sm:$0xf0]  ;;  %v2372_v2 = vld [vmem:[%s2678_s10 + $0x3a4] sm:$0xf]  ;;  %v2212_v5 = vld [vmem:[%s2678_s10 + $0x3a8] sm:$0xf]  ;;  %v1749_v8 = vor.u32 %v2267_v60, %v1748_v58  ;;  %v1753_v11 = vor.u32 %v2259_v61, %v1750_v62 }
  0x57   : > { %1043 = vmatpush.bf16.msrb.mxu2 %v2069_v3  ;;  %v1741_v3 = vor.u32 %v2266_v52, %v1740_v51  ;;  %v2206_v4 = vld [vmem:[%s2678_s10 + $0x3e0] sm:$0xf0]  ;;  %v2381_v6 = vld [vmem:[%s2678_s10 + $0x3e4] sm:$0xf0]  ;;  %v2373_v9 = vld [vmem:[%s2678_s10 + $0x3ac] sm:$0xf]  ;;  %v2205_v12 = vor.u32 %v2380_v1, %v2204_v0 }
  0x58   : > { %1056 = vmatpush.bf16.msrb.mxu3 %v2073_v7  ;;  %v1745_v7 = vor.u32 %v2258_v56, %v1742_v57  ;;  %v2214_v10 = vld [vmem:[%s2678_s10 + $0x3e8] sm:$0xf0]  ;;  %v2364_v16 = vld [vmem:[%s2678_s10 + $0x35c] sm:$0xf0]  ;;  %v2356_v17 = vld [vmem:[%s2678_s10 + $0x324] sm:$0xf] }
  0x59   : > { %v2217_v18 = vor.u32 %v2373_v9, %v2214_v10  ;;  %v2148_v20 = vld [vmem:[%s2678_s10 + $0x328] sm:$0xf]  ;;  %v2357_v22 = vld [vmem:[%s2678_s10 + $0x32c] sm:$0xf]  ;;  %v2348_v28 = vld [vmem:[%s2678_s10 + $0x2dc] sm:$0xf0] }
  0x5a   : > { %1018 = vmatpush.bf16.msrb.mxu0 %v1997_v13  ;;  %1031 = vmatpush.bf16.msrb.mxu1 %v2001_v14  ;;  %v2209_v13 = vor.u32 %v2372_v2, %v2206_v4  ;;  %v2213_v14 = vor.u32 %v2381_v6, %v2212_v5  ;;  %v2365_v21 = vld [vmem:[%s2678_s10 + $0x364] sm:$0xf0]  ;;  %v2150_v23 = vld [vmem:[%s2678_s10 + $0x368] sm:$0xf0]  ;;  %v2340_v29 = vld [vmem:[%s2678_s10 + $0x2a4] sm:$0xf] }
  0x5b   : > { %1044 = vmatpush.bf16.msrb.mxu2 %v2005_v15  ;;  %v2140_v15 = vld [vmem:[%s2678_s10 + $0x320] sm:$0xf]  ;;  %v2153_v30 = vor.u32 %v2357_v22, %v2150_v23  ;;  %v2084_v32 = vld [vmem:[%s2678_s10 + $0x2a8] sm:$0xf]  ;;  %v2341_v34 = vld [vmem:[%s2678_s10 + $0x2ac] sm:$0xf] }
  0x5c   : > { %1057 = vmatpush.bf16.msrb.mxu3 %v2009_v19  ;;  %v2142_v19 = vld [vmem:[%s2678_s10 + $0x360] sm:$0xf0]  ;;  %v2141_v24 = vor.u32 %v2364_v16, %v2140_v15  ;;  %v2349_v33 = vld [vmem:[%s2678_s10 + $0x2e4] sm:$0xf0]  ;;  %v2086_v35 = vld [vmem:[%s2678_s10 + $0x2e8] sm:$0xf0] }
  0x5d   : > { %v2332_v40 = vld [vmem:[%s2678_s10 + $0x25c] sm:$0xf0]  ;;  %v2324_v41 = vld [vmem:[%s2678_s10 + $0x224] sm:$0xf]  ;;  %v2089_v42 = vor.u32 %v2341_v34, %v2086_v35  ;;  %v2020_v44 = vld [vmem:[%s2678_s10 + $0x228] sm:$0xf] }
  0x5e   : > { %1019 = vmatpush.bf16.msrb.mxu0 %v1933_v25  ;;  %1032 = vmatpush.bf16.msrb.mxu1 %v1937_v26  ;;  %v2145_v25 = vor.u32 %v2356_v17, %v2142_v19  ;;  %v2149_v26 = vor.u32 %v2365_v21, %v2148_v20  ;;  %v2333_v45 = vld [vmem:[%s2678_s10 + $0x264] sm:$0xf0]  ;;  %v2325_v46 = vld [vmem:[%s2678_s10 + $0x22c] sm:$0xf]  ;;  %v1948_v52 = vld [vmem:[%s2678_s10 + $0x1a0] sm:$0xf] }
  0x5f   : > { %1045 = vmatpush.bf16.msrb.mxu2 %v1941_v27  ;;  %v2076_v27 = vld [vmem:[%s2678_s10 + $0x2a0] sm:$0xf]  ;;  %v2022_v47 = vld [vmem:[%s2678_s10 + $0x268] sm:$0xf0]  ;;  %v2021_v51 = vor.u32 %v2333_v45, %v2020_v44  ;;  %v1950_v56 = vld [vmem:[%s2678_s10 + $0x1e0] sm:$0xf0] }
  0x60   : > { %1058 = vmatpush.bf16.msrb.mxu3 %v1945_v31  ;;  %v2078_v31 = vld [vmem:[%s2678_s10 + $0x2e0] sm:$0xf0]  ;;  %v2077_v36 = vor.u32 %v2348_v28, %v2076_v27  ;;  %v2316_v53 = vld [vmem:[%s2678_s10 + $0x1dc] sm:$0xf0]  ;;  %v1956_v57 = vld [vmem:[%s2678_s10 + $0x1a8] sm:$0xf] }
  0x61   : > { %v2317_v58 = vld [vmem:[%s2678_s10 + $0x1e4] sm:$0xf0]  ;;  %v1958_v60 = vld [vmem:[%s2678_s10 + $0x1e8] sm:$0xf0]  ;;  %v1949_v61 = vor.u32 %v2316_v53, %v1948_v52  ;;  %v1884_v0 = vld [vmem:[%s2678_s10 + $0x120] sm:$0xf] }
  0x62   : > { %1020 = vmatpush.bf16.msrb.mxu0 %v1869_v37  ;;  %1033 = vmatpush.bf16.msrb.mxu1 %v1873_v38  ;;  %v2081_v37 = vor.u32 %v2340_v29, %v2078_v31  ;;  %v2085_v38 = vor.u32 %v2349_v33, %v2084_v32  ;;  %v1957_v63 = vor.u32 %v2317_v58, %v1956_v57  ;;  %v2300_v1 = vld [vmem:[%s2678_s10 + $0x15c] sm:$0xf0]  ;;  %v2292_v2 = vld [vmem:[%s2678_s10 + $0x124] sm:$0xf]  ;;  %v1892_v5 = vld [vmem:[%s2678_s10 + $0x128] sm:$0xf] }
  0x63   : > { %1046 = vmatpush.bf16.msrb.mxu2 %v1877_v39  ;;  %v2012_v39 = vld [vmem:[%s2678_s10 + $0x220] sm:$0xf]  ;;  %v1886_v4 = vld [vmem:[%s2678_s10 + $0x160] sm:$0xf0]  ;;  %v2301_v6 = vld [vmem:[%s2678_s10 + $0x164] sm:$0xf0]  ;;  %v1885_v9 = vor.u32 %v2300_v1, %v1884_v0 }
  0x64   : > { %1059 = vmatpush.bf16.msrb.mxu3 %v1881_v43  ;;  %v2014_v43 = vld [vmem:[%s2678_s10 + $0x260] sm:$0xf0]  ;;  %v2013_v48 = vor.u32 %v2332_v40, %v2012_v39  ;;  %v1889_v10 = vor.u32 %v2292_v2, %v1886_v4  ;;  %v1828_v17 = vld [vmem:[%s2678_s10 + $0xa8] sm:$0xf]  ;;  %v2277_v19 = vld [vmem:[%s2678_s10 + $0xac] sm:$0xf] }
  0x65   : > { %v1822_v16 = vld [vmem:[%s2678_s10 + $0xe0] sm:$0xf0]  ;;  %v1830_v20 = vld [vmem:[%s2678_s10 + $0xe8] sm:$0xf0]  ;;  %v1756_v22 = vld [vmem:[%s2678_s10 + $0x20] sm:$0xf] }
  0x66   : > { %1021 = vmatpush.bf16.msrb.mxu0 %v1805_v49  ;;  %1034 = vmatpush.bf16.msrb.mxu1 %v1809_v54  ;;  %v2017_v49 = vor.u32 %v2324_v41, %v2014_v43  ;;  %v2308_v54 = vld [vmem:[%s2678_s10 + $0x1a4] sm:$0xf]  ;;  %v2268_v23 = vld [vmem:[%s2678_s10 + $0x5c] sm:$0xf0]  ;;  %v1764_v28 = vld [vmem:[%s2678_s10 + $0x28] sm:$0xf]  ;;  %v1833_v29 = vor.u32 %v2277_v19, %v1830_v20 }
  0x67   : > { %1047 = vmatpush.bf16.msrb.mxu2 %v1813_v55  ;;  %v2025_v55 = vor.u32 %v2325_v46, %v2022_v47  ;;  %v1953_v62 = vor.u32 %v2308_v54, %v1950_v56  ;;  %v1758_v27 = vld [vmem:[%s2678_s10 + $0x60] sm:$0xf0]  ;;  %v2261_v31 = vld [vmem:[%s2678_s10 + $0x2c] sm:$0xf]  ;;  %v2220_v33 = vld [vmem:[%s2678_s10 + $0x3b0] sm:$0xf] }
  0x68   : > { %1060 = vmatpush.bf16.msrb.mxu3 %v1817_v59  ;;  %v2309_v59 = vld [vmem:[%s2678_s10 + $0x1ac] sm:$0xf]  ;;  %v2382_v34 = vld [vmem:[%s2678_s10 + $0x3ec] sm:$0xf0]  ;;  %v2374_v35 = vld [vmem:[%s2678_s10 + $0x3b4] sm:$0xf] }
  0x69   : > { %v1766_v32 = vld [vmem:[%s2678_s10 + $0x68] sm:$0xf0]  ;;  %v2383_v39 = vld [vmem:[%s2678_s10 + $0x3f4] sm:$0xf0]  ;;  %v2230_v43 = vld [vmem:[%s2678_s10 + $0x3f8] sm:$0xf0]  ;;  %v2221_v45 = vor.u32 %v2382_v34, %v2220_v33 }
  0x6a   : > { %1022 = vmatpush.bf16.msrb.mxu0 %v1741_v3  ;;  %1035 = vmatpush.bf16.msrb.mxu1 %v1745_v7  ;;  %v1961_v3 = vor.u32 %v2309_v59, %v1958_v60  ;;  %v2293_v7 = vld [vmem:[%s2678_s10 + $0x12c] sm:$0xf]  ;;  %v1769_v44 = vor.u32 %v2261_v31, %v1766_v32  ;;  %v2158_v53 = vld [vmem:[%s2678_s10 + $0x370] sm:$0xf0]  ;;  %v2164_v54 = vld [vmem:[%s2678_s10 + $0x338] sm:$0xf] }
  0x6b   : > { %1048 = vmatpush.bf16.msrb.mxu2 %v1749_v8  ;;  %v1894_v8 = vld [vmem:[%s2678_s10 + $0x168] sm:$0xf0]  ;;  %v2359_v56 = vld [vmem:[%s2678_s10 + $0x33c] sm:$0xf]  ;;  %v2094_v1 = vld [vmem:[%s2678_s10 + $0x2f0] sm:$0xf0] }
  0x6c   : > { %1061 = vmatpush.bf16.msrb.mxu3 %v1753_v11  ;;  %v1893_v11 = vor.u32 %v2301_v6, %v1892_v5  ;;  %v1897_v15 = vor.u32 %v2293_v7, %v1894_v8  ;;  %v2166_v57 = vld [vmem:[%s2678_s10 + $0x378] sm:$0xf0]  ;;  %v2100_v2 = vld [vmem:[%s2678_s10 + $0x2b8] sm:$0xf]  ;;  %v1900_v33 = vld [vmem:[%s2678_s10 + $0x130] sm:$0xf] }
  0x6d   : > { %1023 = vmatmul.bf16.vlgmr.msrb.gmra.mxu0 %v2765_v50  ;;  %1036 = vmatmul.bf16.vlgmr.msrb.gmra.mxu1 %v2765_v50  ;;  %v2169_v0 = vor.u32 %v2359_v56, %v2166_v57  ;;  %v2343_v4 = vld [vmem:[%s2678_s10 + $0x2bc] sm:$0xf]  ;;  %v2302_v34 = vld [vmem:[%s2678_s10 + $0x16c] sm:$0xf0]  ;;  %s1720_s11 = sshll.u32 %s2674_s30, 7  ;;  %s2384_s19 = sshll.u32 %s2611_s16, 7 }
  0x6e   : > { %1067 = vmatpush.bf16.msra.mxu0 %v2205_v12  ;;  %1080 = vmatpush.bf16.msra.mxu1 %v2209_v13  ;;  %v1820_v12 = vld [vmem:[%s2678_s10 + $0xa0] sm:$0xf]  ;;  %v2102_v5 = vld [vmem:[%s2678_s10 + $0x2f8] sm:$0xf0]  ;;  %s3078_s17 = scalar_lea.vmem [#allocation5], %s1720_s11  ;;  %s1637_s16 = scalar_lea.hbm %s3370_s3, %s2384_s19 }
  0x6f   : > { %1093 = vmatpush.bf16.msra.mxu2 %v2213_v14  ;;  %1062 = vmatmul.bf16.vlgmr.msrb.gmra.mxu3 %v2765_v50  ;;  %v2284_v13 = vld [vmem:[%s2678_s10 + $0xdc] sm:$0xf0]  ;;  %v2276_v14 = vld [vmem:[%s2678_s10 + $0xa4] sm:$0xf]  ;;  %s1639_s27 = sshll.u32 %s3078_s17, 4  ;;  %s1641_s26 = sshll.u32 %s1637_s16, 4  ;;  %s1640_s27 = int_to_ptr.vmem [resolvable:$true] %s1639_s27  ;;  %s1642_s26 = int_to_ptr.hbm [resolvable:$true] %s1641_s26 }
  0x70   : > { %1106 = vmatpush.bf16.msra.mxu3 %v2217_v18  ;;  %1049 = vmatmul.bf16.vlgmr.msrb.gmra.mxu2 %v2765_v50  ;;  %v2285_v18 = vld [vmem:[%s2678_s10 + $0xe4] sm:$0xf0]  ;;  %v1821_v21 = vor.u32 %v2284_v13, %v1820_v12  ;;  %v2105_v12 = vor.u32 %v2343_v4, %v2102_v5  ;;  %v2030_v13 = vld [vmem:[%s2678_s10 + $0x270] sm:$0xf0]  ;;  %s1626_s28 = scalar_lea.sflag [#allocation4], %s2674_s30  ;;  %s2512_s29 = sshra.s32 %s1642_s26, 4  ;;  %s2513_s29 = int_to_ptr.hbm [resolvable:$true] %s2512_s29 }
  0x71   : > { %s2514_s4 = scalar_lea.hbm %s2513_s29, 128  ;;  %s2518_s23 = scalar_lea.hbm %s3370_s3, 256 }
  0x72   : > { %1068 = vmatpush.bf16.msra.mxu0 %v2141_v24  ;;  %1081 = vmatpush.bf16.msra.mxu1 %v2145_v25  ;;  %v1825_v24 = vor.u32 %v2276_v14, %v1822_v16  ;;  %v1829_v25 = vor.u32 %v2285_v18, %v1828_v17  ;;  %v2036_v14 = vld [vmem:[%s2678_s10 + $0x238] sm:$0xf]  ;;  %v2327_v16 = vld [vmem:[%s2678_s10 + $0x23c] sm:$0xf]  ;;  %p2515_p6 = scmp.ne.s32.totalorder %s2513_s29, %s2514_s4  ;;  %p2519_p3 = scmp.lt.s32.totalorder %s2513_s29, %s3370_s3 }
  0x73   : > { %1094 = vmatpush.bf16.msra.mxu2 %v2149_v26  ;;  %v2260_v26 = vld [vmem:[%s2678_s10 + $0x24] sm:$0xf]  ;;  %v2038_v17 = vld [vmem:[%s2678_s10 + $0x278] sm:$0xf0]  ;;  %p2520_p4 = scmp.lt.s32.totalorder %s2518_s23, %s2514_s4 }
  0x74   : > { %1107 = vmatpush.bf16.msra.mxu3 %v2153_v30  ;;  %v2269_v30 = vld [vmem:[%s2678_s10 + $0x64] sm:$0xf0]  ;;  %v1761_v40 = vor.u32 %v2260_v26, %v1758_v27  ;;  %v1972_v26 = vld [vmem:[%s2678_s10 + $0x1b8] sm:$0xf]  ;;  %p2516_p13 = pnand %p2515_p6, %p2640_p11 }
  0x75   : > { %v1765_v41 = vor.u32 %v2269_v30, %v1764_v28  ;;  %v2319_v27 = vld [vmem:[%s2678_s10 + $0x1f4] sm:$0xf0]  ;;  %v2311_v28 = vld [vmem:[%s2678_s10 + $0x1bc] sm:$0xf]  ;;  %p2521_p5 = por %p2520_p4, %p2519_p3 }
  0x76   : > { %1069 = vmatpush.bf16.msra.mxu0 %v2077_v36  ;;  %1082 = vmatpush.bf16.msra.mxu1 %v2081_v37  ;;  %v1757_v36 = vor.u32 %v2268_v23, %v1756_v22  ;;  %v2222_v37 = vld [vmem:[%s2678_s10 + $0x3f0] sm:$0xf0]  ;;  %v2318_v22 = vld [vmem:[%s2678_s10 + $0x1ec] sm:$0xf0]  ;;  %v1973_v32 = vor.u32 %v2319_v27, %v1972_v26  ;;  %p2517_p0 = pneg %p2516_p13 }
  0x77   : > { %1095 = vmatpush.bf16.msra.mxu2 %v2085_v38  ;;  %v2228_v38 = vld [vmem:[%s2678_s10 + $0x3b8] sm:$0xf]  ;;  %v2225_v46 = vor.u32 %v2374_v35, %v2222_v37  ;;  %v2310_v23 = vld [vmem:[%s2678_s10 + $0x1b4] sm:$0xf] }
  0x78   : > { %1108 = vmatpush.bf16.msra.mxu3 %v2089_v42  ;;  %v2375_v42 = vld [vmem:[%s2678_s10 + $0x3bc] sm:$0xf]  ;;  %v2229_v47 = vor.u32 %v2383_v39, %v2228_v38  ;;  %v2294_v35 = vld [vmem:[%s2678_s10 + $0x134] sm:$0xf]  ;;  %v1908_v38 = vld [vmem:[%s2678_s10 + $0x138] sm:$0xf]  ;;  %p2522_p7 = pnand %p2521_p5, %p2517_p0 }
  0x79   : > { %v2233_v52 = vor.u32 %v2375_v42, %v2230_v43  ;;  %v1902_v37 = vld [vmem:[%s2678_s10 + $0x170] sm:$0xf0]  ;;  %v2303_v39 = vld [vmem:[%s2678_s10 + $0x174] sm:$0xf0]  ;;  %v1901_v42 = vor.u32 %v2302_v34, %v1900_v33 }
  0x7a   : > { %1070 = vmatpush.bf16.msra.mxu0 %v2013_v48  ;;  %1083 = vmatpush.bf16.msra.mxu1 %v2017_v49  ;;  %v2156_v48 = vld [vmem:[%s2678_s10 + $0x330] sm:$0xf]  ;;  %v1905_v43 = vor.u32 %v2294_v35, %v1902_v37 }
  0x7b   : > { %1096 = vmatpush.bf16.msra.mxu2 %v2021_v51  ;;  %v2366_v49 = vld [vmem:[%s2678_s10 + $0x36c] sm:$0xf0]  ;;  %v2358_v51 = vld [vmem:[%s2678_s10 + $0x334] sm:$0xf] }
  0x7c   : > { %1109 = vmatpush.bf16.msra.mxu3 %v2025_v55  ;;  %v2367_v55 = vld [vmem:[%s2678_s10 + $0x374] sm:$0xf0]  ;;  %v2157_v58 = vor.u32 %v2366_v49, %v2156_v48  ;;  %v2161_v59 = vor.u32 %v2358_v51, %v2158_v53  ;;  %v1838_v49 = vld [vmem:[%s2678_s10 + $0xf0] sm:$0xf0]  ;;  %v2279_v53 = vld [vmem:[%s2678_s10 + $0xbc] sm:$0xf] }
  0x7d   : > { %v2165_v60 = vor.u32 %v2367_v55, %v2164_v54  ;;  %v1844_v51 = vld [vmem:[%s2678_s10 + $0xb8] sm:$0xf]  ;;  %v1846_v54 = vld [vmem:[%s2678_s10 + $0xf8] sm:$0xf0] }
  0x7e   : > { %1071 = vmatpush.bf16.msra.mxu0 %v1949_v61  ;;  %1084 = vmatpush.bf16.msra.mxu1 %v1953_v62  ;;  %v2092_v61 = vld [vmem:[%s2678_s10 + $0x2b0] sm:$0xf] }
  0x7f   : > { %1097 = vmatpush.bf16.msra.mxu2 %v1957_v63  ;;  %v2350_v62 = vld [vmem:[%s2678_s10 + $0x2ec] sm:$0xf0]  ;;  %v2342_v63 = vld [vmem:[%s2678_s10 + $0x2b4] sm:$0xf] }
  0x80   : > { %1110 = vmatpush.bf16.msra.mxu3 %v1961_v3  ;;  %v2351_v3 = vld [vmem:[%s2678_s10 + $0x2f4] sm:$0xf0]  ;;  %v2093_v6 = vor.u32 %v2350_v62, %v2092_v61  ;;  %v2097_v7 = vor.u32 %v2342_v63, %v2094_v1  ;;  %v1849_v61 = vor.u32 %v2279_v53, %v1846_v54  ;;  %v1774_v62 = vld [vmem:[%s2678_s10 + $0x70] sm:$0xf0]  ;;  %v2263_v1 = vld [vmem:[%s2678_s10 + $0x3c] sm:$0xf] }
  0x81   : > { %v2101_v8 = vor.u32 %v2351_v3, %v2100_v2  ;;  %v1780_v63 = vld [vmem:[%s2678_s10 + $0x38] sm:$0xf]  ;;  %v1782_v2 = vld [vmem:[%s2678_s10 + $0x78] sm:$0xf0] }
  0x82   : > { %1072 = vmatpush.bf16.msra.mxu0 %v1885_v9  ;;  %1085 = vmatpush.bf16.msra.mxu1 %v1889_v10  ;;  %v2028_v9 = vld [vmem:[%s2678_s10 + $0x230] sm:$0xf] }
  0x83   : > { %1098 = vmatpush.bf16.msra.mxu2 %v1893_v11  ;;  %v2334_v10 = vld [vmem:[%s2678_s10 + $0x26c] sm:$0xf0]  ;;  %v2326_v11 = vld [vmem:[%s2678_s10 + $0x234] sm:$0xf] }
  0x84   : > { %1111 = vmatpush.bf16.msra.mxu3 %v1897_v15  ;;  %v2335_v15 = vld [vmem:[%s2678_s10 + $0x274] sm:$0xf0]  ;;  %v2029_v18 = vor.u32 %v2334_v10, %v2028_v9  ;;  %v2033_v19 = vor.u32 %v2326_v11, %v2030_v13 }
  0x85   : > { %v2037_v20 = vor.u32 %v2335_v15, %v2036_v14 }
  0x86   : > { %1073 = vmatpush.bf16.msra.mxu0 %v1821_v21  ;;  %1086 = vmatpush.bf16.msra.mxu1 %v1825_v24  ;;  %v1964_v21 = vld [vmem:[%s2678_s10 + $0x1b0] sm:$0xf]  ;;  %v2041_v24 = vor.u32 %v2327_v16, %v2038_v17 }
  0x87   : > { %1099 = vmatpush.bf16.msra.mxu2 %v1829_v25  ;;  %v1966_v25 = vld [vmem:[%s2678_s10 + $0x1f0] sm:$0xf0]  ;;  %v1965_v30 = vor.u32 %v2318_v22, %v1964_v21 }
  0x88   : > { %1112 = vmatpush.bf16.msra.mxu3 %v1833_v29  ;;  %v1974_v29 = vld [vmem:[%s2678_s10 + $0x1f8] sm:$0xf0]  ;;  %v1969_v31 = vor.u32 %v2310_v23, %v1966_v25 }
  0x8a   : > { %1074 = vmatpush.bf16.msra.mxu0 %v1757_v36  ;;  %1087 = vmatpush.bf16.msra.mxu1 %v1761_v40  ;;  %v1977_v36 = vor.u32 %v2311_v28, %v1974_v29  ;;  %v2295_v40 = vld [vmem:[%s2678_s10 + $0x13c] sm:$0xf] }
  0x8b   : > { %1100 = vmatpush.bf16.msra.mxu2 %v1765_v41  ;;  %v1910_v41 = vld [vmem:[%s2678_s10 + $0x178] sm:$0xf0] }
  0x8c   : > { %1113 = vmatpush.bf16.msra.mxu3 %v1769_v44  ;;  %v1909_v44 = vor.u32 %v2303_v39, %v1908_v38  ;;  %v1913_v48 = vor.u32 %v2295_v40, %v1910_v41 }
  0x8d   : > { %1075 = vmatmul.bf16.vlgmr.msra.gmra.mxu0 %v2765_v50  ;;  %1088 = vmatmul.bf16.vlgmr.msra.gmra.mxu1 %v2765_v50 }
  0x8e   : > { %1119 = vmatpush.bf16.msrb.mxu0 %v2221_v45  ;;  %1132 = vmatpush.bf16.msrb.mxu1 %v2225_v46  ;;  %v1836_v45 = vld [vmem:[%s2678_s10 + $0xb0] sm:$0xf] }
  0x8f   : > { %1145 = vmatpush.bf16.msrb.mxu2 %v2229_v47  ;;  %1114 = vmatmul.bf16.vlgmr.msra.gmra.mxu3 %v2765_v50  ;;  %v2286_v46 = vld [vmem:[%s2678_s10 + $0xec] sm:$0xf0]  ;;  %v2278_v47 = vld [vmem:[%s2678_s10 + $0xb4] sm:$0xf] }
  0x90   : > { %1158 = vmatpush.bf16.msrb.mxu3 %v2233_v52  ;;  %1101 = vmatmul.bf16.vlgmr.msra.gmra.mxu2 %v2765_v50  ;;  %v2287_v52 = vld [vmem:[%s2678_s10 + $0xf4] sm:$0xf0]  ;;  %v1837_v55 = vor.u32 %v2286_v46, %v1836_v45  ;;  %v1841_v56 = vor.u32 %v2278_v47, %v1838_v49  ;;  %v3000_v49 = vstv %s1721_s9 }
  0x91   : > { %v1845_v57 = vor.u32 %v2287_v52, %v1844_v51 }
  0x92   : > { %1120 = vmatpush.bf16.msrb.mxu0 %v2157_v58  ;;  %1133 = vmatpush.bf16.msrb.mxu1 %v2161_v59  ;;  %v1772_v58 = vld [vmem:[%s2678_s10 + $0x30] sm:$0xf] }
  0x93   : > { %1146 = vmatpush.bf16.msrb.mxu2 %v2165_v60  ;;  %v2270_v59 = vld [vmem:[%s2678_s10 + $0x6c] sm:$0xf0]  ;;  %v2262_v60 = vld [vmem:[%s2678_s10 + $0x34] sm:$0xf] }
  0x94   : > { %1159 = vmatpush.bf16.msrb.mxu3 %v2169_v0  ;;  %v2271_v0 = vld [vmem:[%s2678_s10 + $0x74] sm:$0xf0]  ;;  %v1773_v3 = vor.u32 %v2270_v59, %v1772_v58  ;;  %v1777_v4 = vor.u32 %v2262_v60, %v1774_v62 }
  0x95   : > { %v1781_v5 = vor.u32 %v2271_v0, %v1780_v63 }
  0x96   : > { %1121 = vmatpush.bf16.msrb.mxu0 %v2093_v6  ;;  %1134 = vmatpush.bf16.msrb.mxu1 %v2097_v7  ;;  %v1785_v6 = vor.u32 %v2263_v1, %v1782_v2 }
  0x97   : > { %1147 = vmatpush.bf16.msrb.mxu2 %v2101_v8 }
  0x98   : > { %1160 = vmatpush.bf16.msrb.mxu3 %v2105_v12 }
  0x9a   : > { %1122 = vmatpush.bf16.msrb.mxu0 %v2029_v18  ;;  %1135 = vmatpush.bf16.msrb.mxu1 %v2033_v19 }
  0x9b   : > { %1148 = vmatpush.bf16.msrb.mxu2 %v2037_v20 }
  0x9c   : > { %1161 = vmatpush.bf16.msrb.mxu3 %v2041_v24 }
  0x9e   : > { %1123 = vmatpush.bf16.msrb.mxu0 %v1965_v30  ;;  %1136 = vmatpush.bf16.msrb.mxu1 %v1969_v31 }
  0x9f   : > { %1149 = vmatpush.bf16.msrb.mxu2 %v1973_v32  ;;  %v1523_v32 = vlaneseq }
  0xa0   : > { %1162 = vmatpush.bf16.msrb.mxu3 %v1977_v36 }
  0xa1   : > { %v2990_v38 = vand.u32 127, %v1523_v32 }
  0xa2   : > { %1124 = vmatpush.bf16.msrb.mxu0 %v1901_v42  ;;  %1137 = vmatpush.bf16.msrb.mxu1 %v1905_v43 }
  0xa3   : > { %1150 = vmatpush.bf16.msrb.mxu2 %v1909_v44  ;;  %v1541_v62 = vadd.s32 %v3000_v49, %v2990_v38 }
  0xa4   : > { %1163 = vmatpush.bf16.msrb.mxu3 %v1913_v48  ;;  %v1525_v48 = vadd.s32 128, %v2990_v38 }
  0xa6   : > { %1125 = vmatpush.bf16.msrb.mxu0 %v1837_v55  ;;  %1138 = vmatpush.bf16.msrb.mxu1 %v1841_v56  ;;  %v1542_v63 = vadd.s32 %v3000_v49, %v1525_v48 }
  0xa7   : > { %1151 = vmatpush.bf16.msrb.mxu2 %v1845_v57 }
  0xa8   : > { %1164 = vmatpush.bf16.msrb.mxu3 %v1849_v61 }
  0xaa   : > { %1126 = vmatpush.bf16.msrb.mxu0 %v1773_v3  ;;  %1139 = vmatpush.bf16.msrb.mxu1 %v1777_v4 }
  0xab   : > { %1152 = vmatpush.bf16.msrb.mxu2 %v1781_v5 }
  0xac   : > { %1165 = vmatpush.bf16.msrb.mxu3 %v1785_v6 }
  0xad   : > { %1127 = vmatmul.bf16.vlgmr.msrb.gmra.mxu0 %v2765_v50  ;;  %1140 = vmatmul.bf16.vlgmr.msrb.gmra.mxu1 %v2765_v50 }
  0xae   : > { %1153 = vmatmul.bf16.vlgmr.msrb.gmra.mxu2 %v2765_v50 }
  0xaf   : > { %1166 = vmatmul.bf16.vlgmr.msrb.gmra.mxu3 %v2765_v50 }
  0xc7   : > { %v3016_v4 = vpop.permute.xlu0 %1559 }
  0xc8   : > { %vm1561_vm7 = vcmp.eq.s32.totalorder %v1541_v62, %v3016_v4  ;;  %vm1562_vm11 = vcmp.eq.s32.totalorder %v1542_v63, %v3016_v4 }
  0xca   : > { %v2964_v7 = vpop.f32.mrf.mxu0  ;;  %v2968_v9 = vpop.f32.mrf.mxu1 }
  0xcb   : > { %v1171_v8 = vmul.f32 %v2964_v7, %v2964_v7  ;;  %v1172_v10 = vmul.f32 %v2968_v9, %v2968_v9  ;;  %v1427_v41 = vmul.f32 0.87758255, %v2964_v7  ;;  %v2234_v43 = vadd.f32 -0.23971277, %v2964_v7 }
  0xcc   : > { %v2996_v45 = vmul.f32 0.87758255, %v2968_v9  ;;  %vm1475_vm2 = vcmp.gt.f32.partialorder %v2964_v7, -0.87758255  ;;  %vm1476_vm5 = vcmp.gt.f32.partialorder %v2968_v9, -0.87758255 }
  0xcd   : > { %v1187_v11 = vsub.f32 1.0, %v1171_v8  ;;  %v1188_v12 = vsub.f32 1.0, %v1172_v10  ;;  %v2235_v58 = vadd.f32 -0.23971277, %v2968_v9 }
  0xcf   : > { %v1203_v13 = vmax.f32 %v1187_v11, 0.0  ;;  %v1204_v14 = vmax.f32 %v1188_v12, 0.0  ;;  %v1526_v11 = vadd.s32 256, %v2990_v38 }
  0xd1   : > { %v1219_v15 = vmin.f32 %v1203_v13, 1.0  ;;  %v2974_v17 = vmin.f32 %v1204_v14, 1.0 }
  0xd2   : > { %v2978_v18 = vpop.f32.mrf.mxu3  ;;  %v974_v19 = vpop.f32.mrf.mxu0 }
  0xd3   : > { %v2972_v16 = vpop.f32.mrf.mxu2  ;;  %2436 = vrsqrt.f32 %v1219_v15  ;;  %v987_v20 = vpop.f32.mrf.mxu1  ;;  %v1174_v22 = vmul.f32 %v2978_v18, %v2978_v18  ;;  %vm1242_vm0 = vcmp.eq.f32.partialorder %v1219_v15, inf  ;;  %vm1244_vm1 = vcmp.eq.f32.partialorder %v1219_v15, 0.0 }
  0xd4   : > { %v1173_v50 = vmul.f32 %v2972_v16, %v2972_v16  ;;  %2438 = vrsqrt.f32 %v2974_v17  ;;  %v1245_v51 = vand.u32 2147483648, %v1219_v15  ;;  %vm1254_vm3 = vcmp.eq.f32.partialorder %v2974_v17, inf }
  0xd5   : > { %v1190_v24 = vsub.f32 1.0, %v1174_v22  ;;  %v1257_v55 = vand.u32 2147483648, %v2974_v17  ;;  %vm1256_vm4 = vcmp.eq.f32.partialorder %v2974_v17, 0.0  ;;  %v1429_v2 = vmul.f32 0.87758255, %v2972_v16 }
  0xd6   : > { %v1189_v21 = vsub.f32 1.0, %v1173_v50  ;;  %vm1477_vm13 = vcmp.gt.f32.partialorder %v2972_v16, -0.87758255  ;;  %vm1478_vm15 = vcmp.gt.f32.partialorder %v2978_v18, -0.87758255 }
  0xd7   : > { %v1206_v27 = vmax.f32 %v1190_v24, 0.0 }
  0xd8   : > { %v1205_v23 = vmax.f32 %v1189_v21, 0.0 }
  0xd9   : > { %v2437_v25 = vpop.eup %2436  ;;  %v2987_v35 = vmin.f32 %v1206_v27, 1.0  ;;  %v1543_v27 = vadd.s32 %v3000_v49, %v1526_v11 }
  0xda   : > { %v2983_v26 = vmin.f32 %v1205_v23, 1.0  ;;  %v2439_v29 = vpop.eup %2438  ;;  %v1236_v30 = vmul.f32 %v2437_v25, %v1219_v15  ;;  %v1013_v31 = vpop.f32.mrf.mxu3 }
  0xdb   : > { %v1000_v28 = vpop.f32.mrf.mxu2  ;;  %v1248_v33 = vmul.f32 %v2439_v29, %v2974_v17  ;;  %vm1278_vm9 = vcmp.eq.f32.partialorder %v2987_v35, inf  ;;  %vm1280_vm10 = vcmp.eq.f32.partialorder %v2987_v35, 0.0  ;;  %vm1563_vm12 = vcmp.eq.s32.totalorder %v1543_v27, %v3016_v4 }
  0xdc   : > { %2440 = vrsqrt.f32 %v2983_v26  ;;  %v1237_v34 = vmul.f32 %v2437_v25, %v1236_v30  ;;  %vm1266_vm6 = vcmp.eq.f32.partialorder %v2983_v26, inf  ;;  %v1269_v20 = vand.u32 2147483648, %v2983_v26 }
  0xdd   : > { %v1249_v36 = vmul.f32 %v2439_v29, %v1248_v33  ;;  %2442 = vrsqrt.f32 %v2987_v35  ;;  %vm1268_vm8 = vcmp.eq.f32.partialorder %v2983_v26, 0.0  ;;  %v1281_v33 = vand.u32 2147483648, %v2987_v35 }
  0xde   : > { %v1238_v37 = vmul.f32 0.5, %v1237_v34 }
  0xdf   : > { %v1250_v39 = vmul.f32 0.5, %v1249_v36 }
  0xe0   : > { %v1239_v40 = vsub.f32 1.5, %v1238_v37 }
  0xe1   : > { %v1251_v44 = vsub.f32 1.5, %v1250_v39 }
  0xe2   : > { %v2441_v42 = vpop.eup %2440  ;;  %v1240_v46 = vmul.f32 %v2437_v25, %v1239_v40 }
  0xe3   : > { %v1260_v47 = vmul.f32 %v2441_v42, %v2983_v26  ;;  %v1252_v52 = vmul.f32 %v2439_v29, %v1251_v44  ;;  %v2443_v53 = vpop.eup %2442 }
  0xe4   : > { %v1241_v54 = vmul.f32 %v1240_v46, %v1219_v15  ;;  %v1272_v59 = vmul.f32 %v2443_v53, %v2987_v35 }
  0xe5   : > { %v1261_v56 = vmul.f32 %v2441_v42, %v1260_v47  ;;  %v1253_v57 = vmul.f32 %v1252_v52, %v2974_v17 }
  0xe6   : > { %v1243_v60 = vsel %vm1242_vm0, %v1219_v15, %v1241_v54  ;;  %v1273_v3 = vmul.f32 %v2443_v53, %v1272_v59  ;;  %v1430_v54 = vmul.f32 0.87758255, %v2978_v18 }
  0xe7   : > { %v1262_v61 = vmul.f32 0.5, %v1261_v56  ;;  %v1246_v0 = vsel %vm1244_vm1, %v1245_v51, %v1243_v60  ;;  %v1255_v1 = vsel %vm1254_vm3, %v2974_v17, %v1253_v57  ;;  %v1527_v17 = vadd.s32 384, %v2990_v38 }
  0xe8   : > { %v1443_v5 = vmul.f32 0.47942555, %v1246_v0  ;;  %v1258_v6 = vsel %vm1256_vm4, %v1257_v55, %v1255_v1  ;;  %v1274_v13 = vmul.f32 0.5, %v1273_v3 }
  0xe9   : > { %v1263_v8 = vsub.f32 1.5, %v1262_v61  ;;  %v1444_v12 = vmul.f32 0.47942555, %v1258_v6  ;;  %v1544_v46 = vadd.s32 %v3000_v49, %v1527_v17 }
  0xea   : > { %v3018_v10 = vpop.f32.mrf.mxu0  ;;  %v3023_v15 = vpop.f32.mrf.mxu1  ;;  %v1459_v50 = vsub.f32 %v1427_v41, %v1443_v5  ;;  %v1275_v21 = vsub.f32 1.5, %v1274_v13 }
  0xeb   : > { %v1175_v14 = vmul.f32 %v3018_v10, %v3018_v10  ;;  %v1264_v19 = vmul.f32 %v2441_v42, %v1263_v8  ;;  %v1176_v23 = vmul.f32 %v3023_v15, %v3023_v15  ;;  %v1460_v24 = vsub.f32 %v2996_v45, %v1444_v12 }
  0xec   : > { %v1276_v28 = vmul.f32 %v2443_v53, %v1275_v21  ;;  %v1507_v31 = vsel %vm1475_vm2, %v1459_v50, %v2234_v43  ;;  %v2236_v43 = vadd.f32 -0.23971277, %v2972_v16  ;;  %vm1564_vm14 = vcmp.eq.s32.totalorder %v1544_v46, %v3016_v4 }
  0xed   : > { %v1191_v22 = vsub.f32 1.0, %v1175_v14  ;;  %v1265_v25 = vmul.f32 %v1264_v19, %v2983_v26  ;;  %v1192_v30 = vsub.f32 1.0, %v1176_v23  ;;  %v1508_v41 = vsel %vm1476_vm5, %v1460_v24, %v2235_v58 }
  0xee   : > { %v1277_v36 = vmul.f32 %v1276_v28, %v2987_v35  ;;  %v1577_v53 = vsel %vm1561_vm7, %v1507_v31, %v2964_v7  ;;  %v1578_v56 = vsel %vm1562_vm11, %v1508_v41, %v2968_v9  ;;  %v2237_v58 = vadd.f32 -0.23971277, %v2978_v18 }
  0xef   : > { %v1207_v29 = vmax.f32 %v1191_v22, 0.0  ;;  %v1267_v32 = vsel %vm1266_vm6, %v2983_v26, %v1265_v25  ;;  %v1208_v39 = vmax.f32 %v1192_v30, 0.0  ;;  %v1593_v7 = vmul.f32 64.0, %v1577_v53 }
  0xf0   : > { %v1270_v34 = vsel %vm1268_vm8, %v1269_v20, %v1267_v32  ;;  %v1279_v45 = vsel %vm1278_vm9, %v2987_v35, %v1277_v36  ;;  %v1594_v60 = vmul.f32 64.0, %v1578_v56  ;;  %v1528_v22 = vadd.s32 512, %v2990_v38 }
  0xf1   : > { %v3042_v37 = vmin.f32 %v1207_v29, 1.0  ;;  %v1445_v42 = vmul.f32 0.47942555, %v1270_v34  ;;  %v1282_v51 = vsel %vm1280_vm10, %v1281_v33, %v1279_v45  ;;  %v3061_v52 = vmin.f32 %v1208_v39, 1.0  ;;  %1609 = vst [vmem:[%s3078_s17] sm:$0xff] %v1593_v7 }
  0xf2   : > { %v3050_v26 = vpop.f32.mrf.mxu3  ;;  %v1026_v44 = vpop.f32.mrf.mxu0  ;;  %v1446_v55 = vmul.f32 0.47942555, %v1282_v51  ;;  %1610 = vst [vmem:[%s3078_s17 + $0x8] sm:$0xff] %v1594_v60  ;;  %v1529_v25 = vadd.s32 640, %v2990_v38  ;;  %v1431_v30 = vmul.f32 0.87758255, %v3018_v10  ;;  %v1545_v33 = vadd.s32 %v3000_v49, %v1528_v22 }
  0xf3   : > { %v3044_v40 = vpop.f32.mrf.mxu2  ;;  %2444 = vrsqrt.f32 %v3042_v37  ;;  %v1039_v47 = vpop.f32.mrf.mxu1  ;;  %v1461_v48 = vsub.f32 %v1429_v2, %v1445_v42  ;;  %v1178_v3 = vmul.f32 %v3050_v26, %v3050_v26  ;;  %vm1290_vm0 = vcmp.eq.f32.partialorder %v3042_v37, inf }
  0xf4   : > { %2446 = vrsqrt.f32 %v3061_v52  ;;  %v1462_v35 = vsub.f32 %v1430_v54, %v1446_v55  ;;  %v1177_v62 = vmul.f32 %v3044_v40, %v3044_v40  ;;  %v1293_v27 = vand.u32 2147483648, %v3042_v37 }
  0xf5   : > { %v1509_v57 = vsel %vm1477_vm13, %v1461_v48, %v2236_v43  ;;  %v1194_v13 = vsub.f32 1.0, %v1178_v3  ;;  %vm1292_vm1 = vcmp.eq.f32.partialorder %v3042_v37, 0.0  ;;  %vm1479_vm2 = vcmp.gt.f32.partialorder %v3018_v10, -0.87758255 }
  0xf6   : > { %v1579_v59 = vsel %vm1563_vm12, %v1509_v57, %v2972_v16  ;;  %v1510_v9 = vsel %vm1478_vm15, %v1462_v35, %v2237_v58  ;;  %v1193_v2 = vsub.f32 1.0, %v1177_v62  ;;  %v2238_v31 = vadd.f32 -0.23971277, %v3018_v10 }
  0xf7   : > { %v1595_v61 = vmul.f32 64.0, %v1579_v59  ;;  %v1580_v1 = vsel %vm1564_vm14, %v1510_v9, %v2978_v18  ;;  %v1210_v19 = vmax.f32 %v1194_v13, 0.0  ;;  %vm1302_vm3 = vcmp.eq.f32.partialorder %v3061_v52, inf }
  0xf8   : > { %v1596_v6 = vmul.f32 64.0, %v1580_v1  ;;  %v1209_v12 = vmax.f32 %v1193_v2, 0.0  ;;  %v1305_v39 = vand.u32 2147483648, %v3061_v52  ;;  %v1546_v41 = vadd.s32 %v3000_v49, %v1529_v25 }
  0xf9   : > { %v2445_v63 = vpop.eup %2444  ;;  %1611 = vst [vmem:[%s3078_s17 + $0x10] sm:$0xff] %v1595_v61  ;;  %v3093_v23 = vmin.f32 %v1210_v19, 1.0  ;;  %vm1304_vm4 = vcmp.eq.f32.partialorder %v3061_v52, 0.0  ;;  %v1432_v46 = vmul.f32 0.87758255, %v3023_v15  ;;  %vm1565_vm6 = vcmp.eq.s32.totalorder %v1545_v33, %v3016_v4 }
  0xfa   : > { %v1284_v16 = vmul.f32 %v2445_v63, %v3042_v37  ;;  %v1065_v5 = vpop.f32.mrf.mxu3  ;;  %v2447_v8 = vpop.eup %2446  ;;  %1612 = vst [vmem:[%s3078_s17 + $0x18] sm:$0xff] %v1596_v6  ;;  %v3089_v50 = vmin.f32 %v1209_v12, 1.0  ;;  %vm1480_vm5 = vcmp.gt.f32.partialorder %v3023_v15, -0.87758255  ;;  %v2239_v51 = vadd.f32 -0.23971277, %v3023_v15 }
  0xfb   : > { %v1052_v0 = vpop.f32.mrf.mxu2  ;;  %v1296_v14 = vmul.f32 %v2447_v8, %v3061_v52  ;;  %vm1566_vm7 = vcmp.eq.s32.totalorder %v1546_v41, %v3016_v4  ;;  %v1530_v60 = vadd.s32 768, %v2990_v38  ;;  %v1531_v3 = vadd.s32 896, %v2990_v38 }
  0xfc   : > { %v1285_v11 = vmul.f32 %v2445_v63, %v1284_v16  ;;  %2448 = vrsqrt.f32 %v3089_v50  ;;  %vm1314_vm8 = vcmp.eq.f32.partialorder %v3089_v50, inf  ;;  %v1317_v13 = vand.u32 2147483648, %v3089_v50 }
  0xfd   : > { %v1297_v18 = vmul.f32 %v2447_v8, %v1296_v14  ;;  %2450 = vrsqrt.f32 %v3093_v23  ;;  %vm1316_vm9 = vcmp.eq.f32.partialorder %v3089_v50, 0.0  ;;  %vm1326_vm10 = vcmp.eq.f32.partialorder %v3093_v23, inf }
  0xfe   : > { %v1286_v17 = vmul.f32 0.5, %v1285_v11  ;;  %vm1328_vm11 = vcmp.eq.f32.partialorder %v3093_v23, 0.0  ;;  %v1548_v33 = vadd.s32 %v3000_v49, %v1531_v3  ;;  %vm1481_vm12 = vcmp.gt.f32.partialorder %v3044_v40, -0.87758255 }
  0xff   : > { %v1298_v21 = vmul.f32 0.5, %v1297_v18  ;;  %v2240_v41 = vadd.f32 -0.23971277, %v3044_v40  ;;  %vm1482_vm15 = vcmp.gt.f32.partialorder %v3050_v26, -0.87758255 }
 0x100   : > { %v1287_v20 = vsub.f32 1.5, %v1286_v17  ;;  %vm1568_vm14 = vcmp.eq.s32.totalorder %v1548_v33, %v3016_v4 }
 0x101   : > { %v1299_v28 = vsub.f32 1.5, %v1298_v21 }
 0x102   : > { %v1288_v24 = vmul.f32 %v2445_v63, %v1287_v20  ;;  %v2449_v34 = vpop.eup %2448 }
 0x103   : > { %v1300_v32 = vmul.f32 %v2447_v8, %v1299_v28  ;;  %v1308_v44 = vmul.f32 %v2449_v34, %v3089_v50  ;;  %v1329_v28 = vand.u32 2147483648, %v3093_v23 }
 0x104   : > { %v1289_v29 = vmul.f32 %v1288_v24, %v3042_v37 }
 0x105   : > { %v1301_v43 = vmul.f32 %v1300_v32, %v3061_v52  ;;  %v1309_v53 = vmul.f32 %v2449_v34, %v1308_v44  ;;  %v1434_v44 = vmul.f32 0.87758255, %v3050_v26 }
 0x106   : > { %v1291_v36 = vsel %vm1290_vm0, %v3042_v37, %v1289_v29  ;;  %v2451_v37 = vpop.eup %2450 }
 0x107   : > { %v1294_v42 = vsel %vm1292_vm1, %v1293_v27, %v1291_v36  ;;  %v1303_v48 = vsel %vm1302_vm3, %v3061_v52, %v1301_v43  ;;  %v1320_v58 = vmul.f32 %v2451_v37, %v3093_v23  ;;  %v1310_v59 = vmul.f32 0.5, %v1309_v53 }
 0x108   : > { %v1447_v45 = vmul.f32 0.47942555, %v1294_v42  ;;  %v1306_v57 = vsel %vm1304_vm4, %v1305_v39, %v1303_v48  ;;  %v1547_v27 = vadd.s32 %v3000_v49, %v1530_v60 }
 0x109   : > { %v1448_v35 = vmul.f32 0.47942555, %v1306_v57  ;;  %v1321_v61 = vmul.f32 %v2451_v37, %v1320_v58  ;;  %v1311_v0 = vsub.f32 1.5, %v1310_v59 }
 0x10a   : > { %v3114_v47 = vpop.f32.mrf.mxu0  ;;  %v3120_v55 = vpop.f32.mrf.mxu1  ;;  %v1463_v56 = vsub.f32 %v1431_v30, %v1447_v45  ;;  %vm1567_vm13 = vcmp.eq.s32.totalorder %v1547_v27, %v3016_v4 }
 0x10b   : > { %v1179_v54 = vmul.f32 %v3114_v47, %v3114_v47  ;;  %v1180_v62 = vmul.f32 %v3120_v55, %v3120_v55  ;;  %v1464_v63 = vsub.f32 %v1432_v46, %v1448_v35  ;;  %v1322_v2 = vmul.f32 0.5, %v1321_v61 }
 0x10c   : > { %v1511_v52 = vsel %vm1479_vm2, %v1463_v56, %v2238_v31  ;;  %v1312_v8 = vmul.f32 %v2449_v34, %v1311_v0  ;;  %v1433_v31 = vmul.f32 0.87758255, %v3044_v40  ;;  %vm1483_vm2 = vcmp.gt.f32.partialorder %v3114_v47, -0.87758255 }
 0x10d   : > { %v1195_v7 = vsub.f32 1.0, %v1179_v54  ;;  %v1581_v9 = vsel %vm1565_vm6, %v1511_v52, %v3018_v10  ;;  %v1196_v5 = vsub.f32 1.0, %v1180_v62  ;;  %v1512_v6 = vsel %vm1480_vm5, %v1464_v63, %v2239_v51 }
 0x10e   : > { %v1597_v1 = vmul.f32 64.0, %v1581_v9  ;;  %v1582_v10 = vsel %vm1566_vm7, %v1512_v6, %v3023_v15  ;;  %v1323_v14 = vsub.f32 1.5, %v1322_v2  ;;  %v1313_v21 = vmul.f32 %v1312_v8, %v3089_v50 }
 0x10f   : > { %v1211_v16 = vmax.f32 %v1195_v7, 0.0  ;;  %v1212_v17 = vmax.f32 %v1196_v5, 0.0  ;;  %v1598_v20 = vmul.f32 64.0, %v1582_v10  ;;  %v1435_v10 = vmul.f32 0.87758255, %v3114_v47 }
 0x110   : > { %1613 = vst [vmem:[%s3078_s17 + $0x20] sm:$0xff] %v1597_v1  ;;  %v1324_v24 = vmul.f32 %v2451_v37, %v1323_v14  ;;  %v1315_v15 = vsel %vm1314_vm8, %v3089_v50, %v1313_v21  ;;  %v1532_v1 = vadd.s32 1024, %v2990_v38  ;;  %vm1484_vm6 = vcmp.gt.f32.partialorder %v3120_v55, -0.87758255 }
 0x111   : > { %v3135_v11 = vmin.f32 %v1211_v16, 1.0  ;;  %v3149_v25 = vmin.f32 %v1212_v17, 1.0  ;;  %1614 = vst [vmem:[%s3078_s17 + $0x28] sm:$0xff] %v1598_v20  ;;  %v1318_v29 = vsel %vm1316_vm9, %v1317_v13, %v1315_v15  ;;  %v1533_v17 = vadd.s32 1152, %v2990_v38 }
 0x112   : > { %v3144_v19 = vpop.f32.mrf.mxu3  ;;  %v1078_v18 = vpop.f32.mrf.mxu0  ;;  %v1325_v30 = vmul.f32 %v1324_v24, %v3093_v23  ;;  %v1449_v32 = vmul.f32 0.47942555, %v1318_v29  ;;  %v1549_v13 = vadd.s32 %v3000_v49, %v1532_v1  ;;  %v2242_v29 = vadd.f32 -0.23971277, %v3114_v47 }
 0x113   : > { %v3137_v12 = vpop.f32.mrf.mxu2  ;;  %2452 = vrsqrt.f32 %v3135_v11  ;;  %v1091_v22 = vpop.f32.mrf.mxu1  ;;  %v1182_v53 = vmul.f32 %v3144_v19, %v3144_v19  ;;  %vm1338_vm0 = vcmp.eq.f32.partialorder %v3135_v11, inf  ;;  %v1341_v6 = vand.u32 2147483648, %v3135_v11 }
 0x114   : > { %2454 = vrsqrt.f32 %v3149_v25  ;;  %v1327_v50 = vsel %vm1326_vm10, %v3093_v23, %v1325_v30  ;;  %v1181_v34 = vmul.f32 %v3137_v12, %v3137_v12  ;;  %v1465_v39 = vsub.f32 %v1433_v31, %v1449_v32 }
 0x115   : > { %v1330_v42 = vsel %vm1328_vm11, %v1329_v28, %v1327_v50  ;;  %v2241_v23 = vadd.f32 -0.23971277, %v3050_v26  ;;  %v1198_v52 = vsub.f32 1.0, %v1182_v53  ;;  %vm1340_vm1 = vcmp.eq.f32.partialorder %v3135_v11, 0.0 }
 0x116   : > { %v1450_v45 = vmul.f32 0.47942555, %v1330_v42  ;;  %v1197_v37 = vsub.f32 1.0, %v1181_v34  ;;  %v1513_v51 = vsel %vm1481_vm12, %v1465_v39, %v2240_v41  ;;  %vm1350_vm3 = vcmp.eq.f32.partialorder %v3149_v25, inf }
 0x117   : > { %v1583_v56 = vsel %vm1567_vm13, %v1513_v51, %v3044_v40  ;;  %v1214_v0 = vmax.f32 %v1198_v52, 0.0  ;;  %v1353_v21 = vand.u32 2147483648, %v3149_v25  ;;  %vm1352_vm4 = vcmp.eq.f32.partialorder %v3149_v25, 0.0 }
 0x118   : > { %v1466_v57 = vsub.f32 %v1434_v44, %v1450_v45  ;;  %v1213_v35 = vmax.f32 %v1197_v37, 0.0  ;;  %v1599_v59 = vmul.f32 64.0, %v1583_v56  ;;  %vm1569_vm5 = vcmp.eq.s32.totalorder %v1549_v13, %v3016_v4 }
 0x119   : > { %v2453_v36 = vpop.eup %2452  ;;  %v3184_v3 = vmin.f32 %v1214_v0, 1.0  ;;  %v1550_v50 = vadd.s32 %v3000_v49, %v1533_v17  ;;  %v1437_v52 = vmul.f32 0.87758255, %v3137_v12  ;;  %vm1485_vm8 = vcmp.gt.f32.partialorder %v3137_v12, -0.87758255 }
 0x11a   : > { %v1332_v46 = vmul.f32 %v2453_v36, %v3135_v11  ;;  %v1117_v48 = vpop.f32.mrf.mxu3  ;;  %v2455_v54 = vpop.eup %2454  ;;  %v1514_v60 = vsel %vm1482_vm15, %v1466_v57, %v2241_v23  ;;  %v3178_v62 = vmin.f32 %v1213_v35, 1.0  ;;  %1615 = vst [vmem:[%s3078_s17 + $0x30] sm:$0xff] %v1599_v59  ;;  %vm1486_vm15 = vcmp.gt.f32.partialorder %v3144_v19, -0.87758255 }
 0x11b   : > { %v1104_v43 = vpop.f32.mrf.mxu2  ;;  %v1344_v7 = vmul.f32 %v2455_v54, %v3149_v25  ;;  %v1584_v63 = vsel %vm1568_vm14, %v1514_v60, %v3050_v26  ;;  %vm1570_vm7 = vcmp.eq.s32.totalorder %v1550_v50, %v3016_v4  ;;  %v1534_v60 = vadd.s32 1280, %v2990_v38 }
 0x11c   : > { %v1333_v58 = vmul.f32 %v2453_v36, %v1332_v46  ;;  %v1600_v40 = vmul.f32 64.0, %v1584_v63  ;;  %2456 = vrsqrt.f32 %v3178_v62  ;;  %vm1362_vm9 = vcmp.eq.f32.partialorder %v3178_v62, inf }
 0x11d   : > { %v1345_v9 = vmul.f32 %v2455_v54, %v1344_v7  ;;  %2458 = vrsqrt.f32 %v3184_v3  ;;  %v1365_v1 = vand.u32 2147483648, %v3178_v62  ;;  %vm1364_vm10 = vcmp.eq.f32.partialorder %v3178_v62, 0.0 }
 0x11e   : > { %v1334_v61 = vmul.f32 0.5, %v1333_v58  ;;  %1616 = vst [vmem:[%s3078_s17 + $0x38] sm:$0xff] %v1600_v40  ;;  %vm1374_vm11 = vcmp.eq.f32.partialorder %v3184_v3, inf  ;;  %vm1376_vm12 = vcmp.eq.f32.partialorder %v3184_v3, 0.0 }
 0x11f   : > { %v1346_v2 = vmul.f32 0.5, %v1345_v9 }
 0x120   : > { %v1335_v16 = vsub.f32 1.5, %v1334_v61 }
 0x121   : > { %v1347_v8 = vsub.f32 1.5, %v1346_v2 }
 0x122   : > { %v1336_v5 = vmul.f32 %v2453_v36, %v1335_v16  ;;  %v2457_v18 = vpop.eup %2456 }
 0x123   : > { %v1348_v14 = vmul.f32 %v2455_v54, %v1347_v8  ;;  %v1356_v15 = vmul.f32 %v2457_v18, %v3178_v62  ;;  %v2459_v32 = vpop.eup %2458 }
 0x124   : > { %v1337_v26 = vmul.f32 %v1336_v5, %v3135_v11  ;;  %v1368_v41 = vmul.f32 %v2459_v32, %v3184_v3  ;;  %v1535_v5 = vadd.s32 1408, %v2990_v38 }
 0x125   : > { %v1349_v24 = vmul.f32 %v1348_v14, %v3149_v25  ;;  %v1357_v34 = vmul.f32 %v2457_v18, %v1356_v15 }
 0x126   : > { %v1339_v20 = vsel %vm1338_vm0, %v3135_v11, %v1337_v26  ;;  %v1436_v11 = vmul.f32 0.87758255, %v3120_v55  ;;  %v1369_v37 = vmul.f32 %v2459_v32, %v1368_v41  ;;  %v2244_v26 = vadd.f32 -0.23971277, %v3137_v12 }
 0x127   : > { %v1342_v22 = vsel %vm1340_vm1, %v1341_v6, %v1339_v20  ;;  %v1351_v33 = vsel %vm1350_vm3, %v3149_v25, %v1349_v24  ;;  %v1358_v44 = vmul.f32 0.5, %v1357_v34  ;;  %v2243_v25 = vadd.f32 -0.23971277, %v3120_v55 }
 0x128   : > { %v1451_v28 = vmul.f32 0.47942555, %v1342_v22  ;;  %v1354_v39 = vsel %vm1352_vm4, %v1353_v21, %v1351_v33  ;;  %v1370_v56 = vmul.f32 0.5, %v1369_v37  ;;  %v1377_v20 = vand.u32 2147483648, %v3184_v3 }
 0x129   : > { %v1452_v43 = vmul.f32 0.47942555, %v1354_v39  ;;  %v1359_v53 = vsub.f32 1.5, %v1358_v44  ;;  %v1552_v15 = vadd.s32 %v3000_v49, %v1535_v5  ;;  %v1438_v33 = vmul.f32 0.87758255, %v3144_v19 }
 0x12a   : > { %v3202_v27 = vpop.f32.mrf.mxu0  ;;  %v3208_v31 = vpop.f32.mrf.mxu1  ;;  %v1467_v36 = vsub.f32 %v1435_v10, %v1451_v28  ;;  %v1371_v9 = vsub.f32 1.5, %v1370_v56  ;;  %v1551_v10 = vadd.s32 %v3000_v49, %v1534_v60 }
 0x12b   : > { %v1183_v30 = vmul.f32 %v3202_v27, %v3202_v27  ;;  %v1184_v45 = vmul.f32 %v3208_v31, %v3208_v31  ;;  %v1468_v23 = vsub.f32 %v1436_v11, %v1452_v43  ;;  %v1360_v7 = vmul.f32 %v2457_v18, %v1359_v53 }
 0x12c   : > { %v1515_v46 = vsel %vm1483_vm2, %v1467_v36, %v2242_v29  ;;  %v1372_v2 = vmul.f32 %v2459_v32, %v1371_v9  ;;  %vm1571_vm13 = vcmp.eq.s32.totalorder %v1551_v10, %v3016_v4  ;;  %v2245_v36 = vadd.f32 -0.23971277, %v3144_v19 }
 0x12d   : > { %v1199_v42 = vsub.f32 1.0, %v1183_v30  ;;  %v1585_v51 = vsel %vm1569_vm5, %v1515_v46, %v3114_v47  ;;  %v1200_v58 = vsub.f32 1.0, %v1184_v45  ;;  %v1516_v59 = vsel %vm1484_vm6, %v1468_v23, %v2243_v25 }
 0x12e   : > { %v1601_v54 = vmul.f32 64.0, %v1585_v51  ;;  %v1586_v63 = vsel %vm1570_vm7, %v1516_v59, %v3120_v55  ;;  %v1361_v16 = vmul.f32 %v1360_v7, %v3178_v62  ;;  %v1373_v14 = vmul.f32 %v1372_v2, %v3184_v3 }
 0x12f   : > { %v1215_v48 = vmax.f32 %v1199_v42, 0.0  ;;  %v1602_v40 = vmul.f32 64.0, %v1586_v63  ;;  %v1216_v6 = vmax.f32 %v1200_v58, 0.0  ;;  %vm1572_vm14 = vcmp.eq.s32.totalorder %v1552_v15, %v3016_v4 }
 0x130   : > { %1617 = vst [vmem:[%s3078_s17 + $0x40] sm:$0xff] %v1601_v54  ;;  %v1363_v8 = vsel %vm1362_vm9, %v3178_v62, %v1361_v16  ;;  %v1375_v62 = vsel %vm1374_vm11, %v3184_v3, %v1373_v14  ;;  %v1536_v54 = vadd.s32 1536, %v2990_v38  ;;  %v1537_v16 = vadd.s32 1664, %v2990_v38 }
 0x131   : > { %v3224_v57 = vmin.f32 %v1215_v48, 1.0  ;;  %v3226_v35 = vpop.f32.mrf.mxu2  ;;  %1618 = vst [vmem:[%s3078_s17 + $0x48] sm:$0xff] %v1602_v40  ;;  %v1366_v13 = vsel %vm1364_vm10, %v1365_v1, %v1363_v8  ;;  %v3251_v17 = vmin.f32 %v1216_v6, 1.0  ;;  %v1378_v11 = vsel %vm1376_vm12, %v1377_v20, %v1375_v62 }
 0x132   : > { %v3232_v47 = vpop.f32.mrf.mxu3  ;;  %v1130_v61 = vpop.f32.mrf.mxu0  ;;  %v1185_v55 = vmul.f32 %v3226_v35, %v3226_v35  ;;  %v1453_v18 = vmul.f32 0.47942555, %v1366_v13  ;;  %v1454_v50 = vmul.f32 0.47942555, %v1378_v11  ;;  %v1439_v1 = vmul.f32 0.87758255, %v3202_v27 }
 0x133   : > { %2460 = vrsqrt.f32 %v3224_v57  ;;  %v1143_v0 = vpop.f32.mrf.mxu1  ;;  %v1186_v22 = vmul.f32 %v3232_v47, %v3232_v47  ;;  %vm1386_vm0 = vcmp.eq.f32.partialorder %v3224_v57, inf  ;;  %v1553_v61 = vadd.s32 %v3000_v49, %v1536_v54 }
 0x134   : > { %v1201_v21 = vsub.f32 1.0, %v1185_v55  ;;  %2462 = vrsqrt.f32 %v3251_v17  ;;  %v1469_v29 = vsub.f32 %v1437_v52, %v1453_v18  ;;  %v1470_v43 = vsub.f32 %v1438_v33, %v1454_v50 }
 0x135   : > { %v1202_v41 = vsub.f32 1.0, %v1186_v22  ;;  %vm1388_vm1 = vcmp.eq.f32.partialorder %v3224_v57, 0.0  ;;  %vm1487_vm2 = vcmp.gt.f32.partialorder %v3202_v27, -0.87758255  ;;  %v2246_v8 = vadd.f32 -0.23971277, %v3202_v27 }
 0x136   : > { %v1217_v34 = vmax.f32 %v1201_v21, 0.0  ;;  %v1517_v3 = vsel %vm1485_vm8, %v1469_v29, %v2244_v26  ;;  %v1518_v48 = vsel %vm1486_vm15, %v1470_v43, %v2245_v36  ;;  %vm1573_vm3 = vcmp.eq.s32.totalorder %v1553_v61, %v3016_v4 }
 0x137   : > { %v1587_v42 = vsel %vm1571_vm13, %v1517_v3, %v3137_v12  ;;  %v1218_v25 = vmax.f32 %v1202_v41, 0.0  ;;  %v1588_v51 = vsel %vm1572_vm14, %v1518_v48, %v3144_v19  ;;  %v1389_v19 = vand.u32 2147483648, %v3224_v57 }
 0x138   : > { %v3268_v44 = vmin.f32 %v1217_v34, 1.0  ;;  %v1603_v45 = vmul.f32 64.0, %v1587_v42  ;;  %v1604_v53 = vmul.f32 64.0, %v1588_v51  ;;  %vm1398_vm4 = vcmp.eq.f32.partialorder %v3251_v17, inf }
 0x139   : > { %v2461_v24 = vpop.eup %2460  ;;  %v1156_v28 = vpop.f32.mrf.mxu2  ;;  %v3276_v56 = vmin.f32 %v1218_v25, 1.0  ;;  %vm1400_vm5 = vcmp.eq.f32.partialorder %v3251_v17, 0.0  ;;  %v1401_v14 = vand.u32 2147483648, %v3251_v17  ;;  %v1554_v18 = vadd.s32 %v3000_v49, %v1537_v16 }
 0x13a   : > { %v1380_v30 = vmul.f32 %v2461_v24, %v3224_v57  ;;  %v1169_v32 = vpop.f32.mrf.mxu3  ;;  %v2463_v37 = vpop.eup %2462  ;;  %2464 = vrsqrt.f32 %v3268_v44  ;;  %1619 = vst [vmem:[%s3078_s17 + $0x50] sm:$0xff] %v1603_v45  ;;  %v1440_v28 = vmul.f32 0.87758255, %v3208_v31  ;;  %v1538_v29 = vadd.s32 1792, %v2990_v38 }
 0x13b   : > { %v1392_v12 = vmul.f32 %v2463_v37, %v3251_v17  ;;  %1620 = vst [vmem:[%s3078_s17 + $0x58] sm:$0xff] %v1604_v53  ;;  %2466 = vrsqrt.f32 %v3276_v56  ;;  %vm1488_vm6 = vcmp.gt.f32.partialorder %v3208_v31, -0.87758255  ;;  %v2247_v50 = vadd.f32 -0.23971277, %v3208_v31 }
 0x13c   : > { %v1381_v39 = vmul.f32 %v2461_v24, %v1380_v30  ;;  %vm1574_vm7 = vcmp.eq.s32.totalorder %v1554_v18, %v3016_v4  ;;  %vm1410_vm8 = vcmp.eq.f32.partialorder %v3268_v44, inf  ;;  %vm1412_vm9 = vcmp.eq.f32.partialorder %v3268_v44, 0.0 }
 0x13d   : > { %v1393_v59 = vmul.f32 %v2463_v37, %v1392_v12  ;;  %v1413_v3 = vand.u32 2147483648, %v3268_v44  ;;  %v1555_v36 = vadd.s32 %v3000_v49, %v1538_v29  ;;  %v1539_v43 = vadd.s32 1920, %v2990_v38 }
 0x13e   : > { %v1382_v46 = vmul.f32 0.5, %v1381_v39  ;;  %vm1422_vm11 = vcmp.eq.f32.partialorder %v3276_v56, inf  ;;  %vm1424_vm12 = vcmp.eq.f32.partialorder %v3276_v56, 0.0  ;;  %vm1489_vm13 = vcmp.gt.f32.partialorder %v3226_v35, -0.87758255 }
 0x13f   : > { %v1394_v52 = vmul.f32 0.5, %v1393_v59  ;;  %vm1575_vm10 = vcmp.eq.s32.totalorder %v1555_v36, %v3016_v4  ;;  %v1556_v12 = vadd.s32 %v3000_v49, %v1539_v43  ;;  %vm1490_vm15 = vcmp.gt.f32.partialorder %v3232_v47, -0.87758255 }
 0x140   : > { %v1383_v23 = vsub.f32 1.5, %v1382_v46  ;;  %v2465_v60 = vpop.eup %2464 }
 0x141   : > { %v1395_v9 = vsub.f32 1.5, %v1394_v52  ;;  %v1404_v0 = vmul.f32 %v2465_v60, %v3268_v44  ;;  %v2467_v55 = vpop.eup %2466  ;;  %vm1576_vm14 = vcmp.eq.s32.totalorder %v1556_v12, %v3016_v4 }
 0x142   : > { %v1384_v58 = vmul.f32 %v2461_v24, %v1383_v23  ;;  %v1416_v13 = vmul.f32 %v2467_v55, %v3276_v56  ;;  %v2248_v23 = vadd.f32 -0.23971277, %v3226_v35 }
 0x143   : > { %v1396_v5 = vmul.f32 %v2463_v37, %v1395_v9  ;;  %v1405_v6 = vmul.f32 %v2465_v60, %v1404_v0  ;;  %v1441_v37 = vmul.f32 0.87758255, %v3226_v35 }
 0x144   : > { %v1385_v7 = vmul.f32 %v1384_v58, %v3224_v57  ;;  %v1417_v24 = vmul.f32 %v2467_v55, %v1416_v13  ;;  %v1442_v58 = vmul.f32 0.87758255, %v3232_v47 }
 0x145   : > { %v1406_v10 = vmul.f32 0.5, %v1405_v6 }
 0x146   : > { %v1387_v63 = vsel %vm1386_vm0, %v3224_v57, %v1385_v7  ;;  %v1397_v57 = vmul.f32 %v1396_v5, %v3251_v17  ;;  %v1418_v33 = vmul.f32 0.5, %v1417_v24 }
 0x147   : > { %v1390_v40 = vsel %vm1388_vm1, %v1389_v19, %v1387_v63  ;;  %v1407_v22 = vsub.f32 1.5, %v1406_v10 }
 0x148   : > { %v1455_v2 = vmul.f32 0.47942555, %v1390_v40  ;;  %v1399_v21 = vsel %vm1398_vm4, %v3251_v17, %v1397_v57 }
 0x149   : > { %v1402_v15 = vsel %vm1400_vm5, %v1401_v14, %v1399_v21  ;;  %v1408_v32 = vmul.f32 %v2465_v60, %v1407_v22  ;;  %v2249_v60 = vadd.f32 -0.23971277, %v3232_v47 }
 0x14a   : > { %v1471_v26 = vsub.f32 %v1439_v1, %v1455_v2  ;;  %v1456_v30 = vmul.f32 0.47942555, %v1402_v15 }
 0x14b   : > { %v1409_v17 = vmul.f32 %v1408_v32, %v3268_v44 }
 0x14c   : > { %v1519_v20 = vsel %vm1487_vm2, %v1471_v26, %v2246_v8  ;;  %v1472_v34 = vsub.f32 %v1440_v28, %v1456_v30 }
 0x14d   : > { %v1589_v62 = vsel %vm1573_vm3, %v1519_v20, %v3202_v27  ;;  %v1419_v27 = vsub.f32 1.5, %v1418_v33  ;;  %v1411_v41 = vsel %vm1410_vm8, %v3268_v44, %v1409_v17  ;;  %v1425_v44 = vand.u32 2147483648, %v3276_v56 }
 0x14e   : > { %v1605_v11 = vmul.f32 64.0, %v1589_v62  ;;  %v1520_v39 = vsel %vm1488_vm6, %v1472_v34, %v2247_v50  ;;  %v1414_v46 = vsel %vm1412_vm9, %v1413_v3, %v1411_v41 }
 0x14f   : > { %v1420_v42 = vmul.f32 %v2467_v55, %v1419_v27  ;;  %v1590_v45 = vsel %vm1574_vm7, %v1520_v39, %v3208_v31  ;;  %v1457_v48 = vmul.f32 0.47942555, %v1414_v46 }
 0x150   : > { %1621 = vst [vmem:[%s3078_s17 + $0x60] sm:$0xff] %v1605_v11  ;;  %v1606_v25 = vmul.f32 64.0, %v1590_v45 }
 0x151   : > { %v1421_v51 = vmul.f32 %v1420_v42, %v3276_v56  ;;  %v1473_v38 = vsub.f32 %v1441_v37, %v1457_v48 }
 0x152   : > { %1622 = vst [vmem:[%s3078_s17 + $0x68] sm:$0xff] %v1606_v25 }
 0x153   : > { %v1423_v31 = vsel %vm1422_vm11, %v3276_v56, %v1421_v51  ;;  %v1521_v54 = vsel %vm1489_vm13, %v1473_v38, %v2248_v23 }
 0x154   : > { %v1426_v53 = vsel %vm1424_vm12, %v1425_v44, %v1423_v31  ;;  %v1591_v7 = vsel %vm1575_vm10, %v1521_v54, %v3226_v35 }
 0x155   : > { %v1458_v59 = vmul.f32 0.47942555, %v1426_v53  ;;  %v1607_v52 = vmul.f32 64.0, %v1591_v7 }
 0x157   : > { %v1474_v56 = vsub.f32 %v1442_v58, %v1458_v59  ;;  %1623 = vst [vmem:[%s3078_s17 + $0x70] sm:$0xff] %v1607_v52 }
 0x159   : > { %v1522_v49 = vsel %vm1490_vm15, %v1474_v56, %v2249_v60 }
 0x15a   : > { %v1592_v19 = vsel %vm1576_vm14, %v1522_v49, %v3232_v47 }
 0x15b   : > { %v1608_v61 = vmul.f32 64.0, %v1592_v19 }
 0x15d   : > { %1624 = vst [vmem:[%s3078_s17 + $0x78] sm:$0xff] %v1608_v61 }
 0x15e   : > { %2525 = shalt.err (!%p2522_p7)
}
 0x15f   : > { %2387 = dma.vmem_to_hbm [thread:$0]  (%p2640_p11), %s1640_s27, 2048, %s1642_s26, %s1626_s28  }
 0x160 PF: > { %s1653_s30 = sand.u32 1, %s2552_s12   ;;  %p2394_p8 = pnand %p1714_p9, %p2644_p12 }
 0x161   : > { %s1654_s8 = scalar_lea.sflag [#allocation4], %s1653_s30 }
 0x162   : > { %p2395_p10 = pneg %p2394_p8 }
 0x164   : > { %2547 = dma.done.wait (%p2395_p10), %s1654_s8, 2048  }
 0x165   : > { %2549 = vsyncadd (%p2395_p10), %s1654_s8, 4294965248  ;;  %p16_p1 = scmp.ge.s32.totalorder %s2615_s18, 4   ;;  %s3376_s12 = smov %s2556_s13 }
 0x166   : > { %s3377_s13 = smov %s2560_s14  ;;  %s3378_s14 = smov %s2627_s21 }
 0x167   : > { %s3379_s15 = smov %s2615_s18  ;;  %18 = sbr.rel (!%p16_p1) target bundleno = 5 (0x5), region = 77 }
 0x16c   :  { %1660 = vsyncpa [#allocation3], 1 }
 0x16d   :  { %1662 = vsyncpa [#allocation3 + $0x1], 1 }
 0x16e   :  { %1663 = vsyncpa [#allocation4], 1 }
 0x16f   :  { %1665 = vsyncpa [#allocation4 + $0x1], 1 }

</bundles_post_ra>
